<compile_context>
chip_gen: v7x
topology: tpu7x:2x2x1
jax: 0.10.0
libtpu: 0.0.40
codegen_flags: <defaults>
</compile_context>

<pallas_src>
import functools

import jax
import jax.numpy as jnp
from jax.experimental import pallas as pl
from jax.experimental.pallas import tpu as pltpu


def _tvm_graph_kernel(x_ref, w_ref, b_ref, scale_ref, o_ref):
    """Tiled fused dense graph: out = relu(x @ W + b) * scale.

    Grid = (M/tm, N/tn, K/tk).
    NOTE: correctness requires K to be the LAST (innermost) grid axis, marked
    "arbitrary", and the out/bias/scale index_maps to ignore k -- the f32 output
    tile then stays resident in VMEM across the K loop and is used directly as
    the accumulator (no scratch needed).
    """
    k = pl.program_id(2)
    nk = pl.num_programs(2)

    @pl.when(k == 0)
    def _init():
        o_ref[...] = jnp.zeros_like(o_ref)

    # bf16 x bf16 -> f32 accumulate on the MXU, directly into the resident output tile.
    o_ref[...] += jnp.dot(
        x_ref[...], w_ref[...], preferred_element_type=jnp.float32
    )

    @pl.when(k == nk - 1)
    def _finalize():
        # Epilogue in f32 (v5e has no bf16 VPU); bias/scale tiles are resident
        # across the K loop (their index_map ignores k), so no re-DMA here.
        y = o_ref[...] + b_ref[...].astype(jnp.float32)
        y = jnp.maximum(y, 0.0)
        o_ref[...] = y * scale_ref[...].astype(jnp.float32)


@functools.partial(jax.jit, static_argnames=("tm", "tn", "tk"))
def _fused_dense_relu_scale(x_bf16, w_bf16, b, scale_bf16, *, tm, tn, tk):
    """out = relu(x @ W + b) * scale, tiled for the MXU."""
    M, K = x_bf16.shape
    K2, N = w_bf16.shape
    assert K == K2 and b.shape == (1, N) and scale_bf16.shape == (M, N)
    # TODO(synk): non-multiple shapes would need padding/masking; the synthetic
    # graph only sees 128-aligned shapes so we keep hard asserts.
    assert M % tm == 0 and N % tn == 0 and K % tk == 0

    grid = (M // tm, N // tn, K // tk)

    return pl.pallas_call(
        _tvm_graph_kernel,
        out_shape=jax.ShapeDtypeStruct((M, N), jnp.float32),
        grid_spec=pltpu.PrefetchScalarGridSpec(
            num_scalar_prefetch=0,
            grid=grid,
            in_specs=[
                pl.BlockSpec((tm, tk), lambda i, j, k: (i, k)),   # x tile
                pl.BlockSpec((tk, tn), lambda i, j, k: (k, j)),   # w tile
                pl.BlockSpec((1, tn), lambda i, j, k: (0, j)),    # bias (resident over k)
                pl.BlockSpec((tm, tn), lambda i, j, k: (i, j)),   # scale bf16 (resident over k)
            ],
            # Output index_map ignores k -> the f32 tile doubles as the accumulator.
            out_specs=pl.BlockSpec((tm, tn), lambda i, j, k: (i, j)),
        ),
        compiler_params=pltpu.CompilerParams(
            # K reduction axis MUST stay "arbitrary" (and innermost) for the
            # accumulate-into-output pattern above to be correct.
            dimension_semantics=("parallel", "parallel", "arbitrary"),
            # Big enough for (512,512,1024)-class double-buffered tiles, while
            # staying well under v7x's 64 MiB per-TensorCore physical VMEM.
            vmem_limit_bytes=48 * 1024 * 1024,
        ),
    )(x_bf16, w_bf16, b, scale_bf16)


def _pick_tile(dim, candidates):
    """Largest candidate tile that evenly divides `dim` (falls back to `dim`)."""
    for c in candidates:
        if c <= dim and dim % c == 0:
            return c
    return dim


def _pick_tiles(M, K, N):
    # Aim for >=256-wide M/N tiles (full-width 256x256 MXU on v6e/v7x) and long K
    # tiles to minimise grid steps; collapse to the full dim when it fits.
    tm = _pick_tile(M, (512, 384, 256, 128))
    tn = _pick_tile(N, (512, 384, 256, 128))
    tk = _pick_tile(K, (2048, 1024, 512, 256))
    return tm, tn, tk


class _SyntheticTvmEngine:
    """Stand-in for torch.classes.tvm_dsoop.TvmGraphModule: List[Tensor] -> List[Tensor]."""

    def __init__(self, w, b):
        # Weights are stored pre-cast to bf16 (MXU-native dtype on v6e/v7x).
        self.w = w.astype(jnp.bfloat16)
        self.b = b.astype(jnp.float32)

    def forward(self, inputs):
        x, scale = inputs
        # TODO(synk): if forward() is called repeatedly with f32 inputs, the bf16
        # casts below are separate XLA passes over x/scale; hoist/cache them (or use
        # allow_input_fusion) in a production path.
        x_bf16 = x.astype(jnp.bfloat16)
        scale_bf16 = scale.astype(jnp.bfloat16)

        M, K = x_bf16.shape
        _, N = self.w.shape
        tm, tn, tk = _pick_tiles(M, K, N)
        out = _fused_dense_relu_scale(
            x_bf16, self.w, self.b, scale_bf16, tm=tm, tn=tn, tk=tk
        )
        return [out]


class GraphModule:
    """JAX/Pallas port of tvm.contrib.torch.GraphModule.

    forward(inputs): pass the list of input tensors to the wrapped engine and return
    the engine's list of output tensors (same List->List contract as the original).
    """

    def __init__(self, num_inputs, num_outputs, device=None):
        self.num_inputs = num_inputs
        self.num_outputs = num_outputs
        self.engine = None
        # TODO(synk): device placement / _apply(fn) has no Pallas-side equivalent;
        # arrays live on the default TPU backend.

    def init(self, w, b):
        """Load the (synthetic) compiled graph instead of lib/graph/params files."""
        self.engine = _SyntheticTvmEngine(w, b)

    def forward(self, inputs):
        assert self.engine is not None, "call init() first"
        assert len(inputs) == self.num_inputs
        outputs = self.engine.forward(inputs)
        assert len(outputs) == self.num_outputs
        return outputs

    __call__ = forward


if __name__ == "__main__":
    # MXU/tile-friendly but still small shapes: M=256, K=512, N=256.
    # _pick_tiles collapses this to (tm, tn, tk) = (256, 256, 512) -> grid (1, 1, 1),
    # i.e. a single kernel invocation with no per-step pipeline overhead.
    M, K, N = 256, 512, 256
    key = jax.random.PRNGKey(0)
    kx, ks, kw, kb = jax.random.split(key, 4)

    x = jax.random.normal(kx, (M, K), dtype=jnp.float32)
    scale = jax.random.normal(ks, (M, N), dtype=jnp.float32)

    # Deterministic synthetic "compiled graph" parameters.
    w = jax.random.normal(kw, (K, N), dtype=jnp.float32) * 0.1
    b = jax.random.normal(kb, (1, N), dtype=jnp.float32) * 0.1

    graph_module = GraphModule(num_inputs=2, num_outputs=1)
    graph_module.init(w, b)

    outputs = graph_module([x, scale])      # List[Tensor] -> List[Tensor]
    out = jax.block_until_ready(outputs[0])

    # Reference check (plain JAX) against the same bf16-quantized operands.
    x_q = x.astype(jnp.bfloat16).astype(jnp.float32)
    w_q = w.astype(jnp.bfloat16).astype(jnp.float32)
    s_q = scale.astype(jnp.bfloat16).astype(jnp.float32)
    ref = jnp.maximum(x_q @ w_q + b, 0.0) * s_q

    assert out.shape == (M, N) and out.dtype == jnp.float32
    assert jnp.allclose(out, ref, atol=1e-3, rtol=1e-3)

    print("KERNEL_OK")
</pallas_src>

<mosaic_0001>
module attributes {stable_mosaic.version = 11 : i64} {
  func.func @_tvm_graph_kernel(%arg0: i32, %arg1: i32, %arg2: i32, %arg3: memref<256x512xbf16, #tpu.memory_space<vmem>>, %arg4: memref<512x256xbf16, #tpu.memory_space<vmem>>, %arg5: memref<1x256xf32, #tpu.memory_space<vmem>>, %arg6: memref<256x256xbf16, #tpu.memory_space<vmem>>, %arg7: memref<256x256xf32, #tpu.memory_space<vmem>>) attributes {dimension_semantics = [#tpu.dimension_semantics<parallel>, #tpu.dimension_semantics<parallel>, #tpu.dimension_semantics<arbitrary>], iteration_bounds = array<i64: 1, 1, 1>, scalar_prefetch = 0 : i64, scratch_operands = 0 : i64, tpu.core_type = #tpu.core_type<tc>, window_params = [{transform_indices = @transform_0, window_bounds = array<i64: 256, 512>}, {transform_indices = @transform_1, window_bounds = array<i64: 512, 256>}, {transform_indices = @transform_2, window_bounds = array<i64: 1, 256>}, {transform_indices = @transform_3, window_bounds = array<i64: 256, 256>}, {transform_indices = @transform_4, window_bounds = array<i64: 256, 256>}]} {
    %c0_i32 = arith.constant 0 : i32
    %0 = arith.cmpi eq, %arg2, %c0_i32 : i32
    %1 = arith.extui %0 : i1 to i32
    %c0_i32_0 = arith.constant 0 : i32
    %2 = arith.cmpi ne, %1, %c0_i32_0 : i32
    scf.if %2 {
      %cst_10 = arith.constant 0.000000e+00 : f32
      %12 = vector.broadcast %cst_10 : f32 to vector<256x256xf32>
      %c0_11 = arith.constant 0 : index
      %c0_12 = arith.constant 0 : index
      %13 = vector.load %arg7[%c0_11, %c0_12] : memref<256x256xf32, #tpu.memory_space<vmem>>, vector<256x256xf32>
      tpu.vector_store %arg7[%c0_11, %c0_12], %12 {strides = array<i32>} : memref<256x256xf32, #tpu.memory_space<vmem>>, vector<256x256xf32>,
    } else {
    }
    %c0 = arith.constant 0 : index
    %c0_1 = arith.constant 0 : index
    %3 = vector.load %arg7[%c0, %c0_1] : memref<256x256xf32, #tpu.memory_space<vmem>>, vector<256x256xf32>
    %c0_2 = arith.constant 0 : index
    %c0_3 = arith.constant 0 : index
    %4 = vector.load %arg3[%c0_2, %c0_3] : memref<256x512xbf16, #tpu.memory_space<vmem>>, vector<256x512xbf16>
    %c0_4 = arith.constant 0 : index
    %c0_5 = arith.constant 0 : index
    %5 = vector.load %arg4[%c0_4, %c0_5] : memref<512x256xbf16, #tpu.memory_space<vmem>>, vector<512x256xbf16>
    %cst = arith.constant dense<0.000000e+00> : vector<256x256xf32>
    %6 = tpu.matmul %4, %5, %cst {dimension_numbers = #tpu.dot_dimension_numbers<[1], [0], [0], [1], [0, 0, 1, 1], [], []>} : vector<256x512xbf16>, vector<512x256xbf16>, vector<256x256xf32> -> vector<256x256xf32>
    %7 = arith.addf %3, %6 : vector<256x256xf32>
    %c0_6 = arith.constant 0 : index
    %c0_7 = arith.constant 0 : index
    %8 = vector.load %arg7[%c0_6, %c0_7] : memref<256x256xf32, #tpu.memory_space<vmem>>, vector<256x256xf32>
    tpu.vector_store %arg7[%c0_6, %c0_7], %7 {strides = array<i32>} : memref<256x256xf32, #tpu.memory_space<vmem>>, vector<256x256xf32>,
    %c0_i32_8 = arith.constant 0 : i32
    %9 = arith.cmpi eq, %arg2, %c0_i32_8 : i32
    %10 = arith.extui %9 : i1 to i32
    %c0_i32_9 = arith.constant 0 : i32
    %11 = arith.cmpi ne, %10, %c0_i32_9 : i32
    scf.if %11 {
      %c0_10 = arith.constant 0 : index
      %c0_11 = arith.constant 0 : index
      %12 = vector.load %arg7[%c0_10, %c0_11] : memref<256x256xf32, #tpu.memory_space<vmem>>, vector<256x256xf32>
      %c0_12 = arith.constant 0 : index
      %c0_13 = arith.constant 0 : index
      %13 = vector.load %arg5[%c0_12, %c0_13] : memref<1x256xf32, #tpu.memory_space<vmem>>, vector<1x256xf32>
      %14 = vector.broadcast %13 : vector<1x256xf32> to vector<256x256xf32>
      %15 = arith.addf %12, %14 : vector<256x256xf32>
      %cst_14 = arith.constant 0.000000e+00 : f32
      %16 = vector.broadcast %cst_14 : f32 to vector<256x256xf32>
      %17 = arith.maximumf %15, %16 : vector<256x256xf32>
      %c0_15 = arith.constant 0 : index
      %c0_16 = arith.constant 0 : index
      %18 = vector.load %arg6[%c0_15, %c0_16] : memref<256x256xbf16, #tpu.memory_space<vmem>>, vector<256x256xbf16>
      %19 = arith.extf %18 : vector<256x256xbf16> to vector<256x256xf32>
      %20 = arith.mulf %17, %19 : vector<256x256xf32>
      %c0_17 = arith.constant 0 : index
      %c0_18 = arith.constant 0 : index
      %21 = vector.load %arg7[%c0_17, %c0_18] : memref<256x256xf32, #tpu.memory_space<vmem>>, vector<256x256xf32>
      tpu.vector_store %arg7[%c0_17, %c0_18], %20 {strides = array<i32>} : memref<256x256xf32, #tpu.memory_space<vmem>>, vector<256x256xf32>,
    } else {
    }
    return
  }
  func.func @transform_0(%arg0: i32, %arg1: i32, %arg2: i32) -> (i32, i32) {
    %c0_i32 = arith.constant 0 : i32
    return %arg0, %arg2 : i32, i32
  }
  func.func @transform_1(%arg0: i32, %arg1: i32, %arg2: i32) -> (i32, i32) {
    %c0_i32 = arith.constant 0 : i32
    return %arg2, %arg1 : i32, i32
  }
  func.func @transform_2(%arg0: i32, %arg1: i32, %arg2: i32) -> (i32, i32) {
    %c0_i32 = arith.constant 0 : i32
    %c0_i32_0 = arith.constant 0 : i32
    return %c0_i32, %arg1 : i32, i32
  }
  func.func @transform_3(%arg0: i32, %arg1: i32, %arg2: i32) -> (i32, i32) {
    %c0_i32 = arith.constant 0 : i32
    return %arg0, %arg1 : i32, i32
  }
  func.func @transform_4(%arg0: i32, %arg1: i32, %arg2: i32) -> (i32, i32) {
    %c0_i32 = arith.constant 0 : i32
    return %arg0, %arg1 : i32, i32
  }
}

</mosaic_0001>

<bundles_post_ra>
// kernel: _fused_dense_relu_scale.1
= control target key start
LH: loop header
LB: loop body
LE: loop exit
PB: predicated region body
PF: predicated region fallthrough
CT: control target
= control target key end

     0   :  { %9 = vsyncpa [#allocation3], 0  ;;  %s2573_s0 = inlined_call_operand.hbm [shape: bf16[256,512], index: 0, kind: input, shape index: {}]   ;;  %s2574_s1 = inlined_call_operand.hbm [shape: bf16[512,256], index: 1, kind: input, shape index: {}]   ;;  %s2575_s2 = inlined_call_operand.vmem [shape: f32[1,256], index: 2, kind: input, shape index: {}]   ;;  %s2576_s3 = inlined_call_operand.hbm [shape: bf16[256,256], index: 3, kind: input, shape index: {}]   ;;  %s2577_s4 = inlined_call_operand.hbm [shape: f32[256,256], index: 4, kind: output, shape index: {}]  }
   0x1   :  { %10 = vsyncpa [#allocation6], 0 }
   0x2   :  { %11 = vsyncpa [#allocation4], 0  ;;  %s2409_s15 = smov [#allocation5]   ;;  %s2315_s19 = scalar_lea.hbm %s2574_s1, 8192 }
   0x3   :  { %s29_s16 = sshll.u32 %s2409_s15, 4  ;;  %p2316_p0 = scmp.ne.s32.totalorder %s2574_s1, %s2315_s19  ;;  %s30_s16 = int_to_ptr.vmem [resolvable:$true] %s29_s16 }
   0x4   :  { %p2319_p1 = scmp.lt.u32.totalorder %s2315_s19, %s2574_s1 }
   0x6   :  { %p2321_p2 = pnand %p2319_p1, %p2316_p0 }
   0x8   :  { %2324 = shalt.err (!%p2321_p2)
}
   0x9   :  { %s2325_s24 = scalar_lea.vmem %s30_s16, 8192  ;;  %p2330_p4 = scmp.lt.s32.totalorder %s30_s16, %s30_s16 }
   0xa   :  { %p2326_p3 = scmp.ne.s32.totalorder %s30_s16, %s2325_s24  ;;  %p2331_p5 = scmp.lt.s32.totalorder %s2325_s24, %s2325_s24 }
   0xc   :  { %p2332_p6 = por %p2331_p5, %p2330_p4 }
   0xe   :  { %p2333_p7 = pnand %p2332_p6, %p2326_p3 }
  0x10   :  { %2336 = shalt.err (!%p2333_p7)
}
  0x11   :  { %s2410_s25 = smov 128   ;;  %s2411_s26 = smov 8  }
  0x12   :  { %35 = dma.hbm_to_vmem [thread:$0]  %s2574_s1, 8192, %s30_s16, [#allocation6], %s2410_s25, %s2410_s25, %s2411_s26  }
  0x13   :  { %s2412_s29 = smov [#allocation2]   ;;  %s2337_s7 = scalar_lea.hbm %s2573_s0, 8192 }
  0x14   :  { %s17_s30 = sshll.u32 %s2412_s29, 4  ;;  %p2338_p8 = scmp.ne.s32.totalorder %s2573_s0, %s2337_s7  ;;  %s18_s30 = int_to_ptr.vmem [resolvable:$true] %s17_s30 }
  0x15   :  { %p2341_p9 = scmp.lt.u32.totalorder %s2337_s7, %s2573_s0 }
  0x17   :  { %p2343_p10 = pnand %p2341_p9, %p2338_p8 }
  0x19   :  { %2346 = shalt.err (!%p2343_p10)
}
  0x1a   :  { %s2347_s12 = scalar_lea.vmem %s18_s30, 8192  ;;  %p2352_p12 = scmp.lt.s32.totalorder %s18_s30, %s18_s30 }
  0x1b   :  { %p2348_p11 = scmp.ne.s32.totalorder %s18_s30, %s2347_s12  ;;  %p2353_p13 = scmp.lt.s32.totalorder %s2347_s12, %s2347_s12 }
  0x1d   :  { %p2354_p0 = por %p2353_p13, %p2352_p12 }
  0x1f   :  { %p2355_p1 = pnand %p2354_p0, %p2348_p11 }
  0x21   :  { %2358 = shalt.err (!%p2355_p1)
}
  0x22   :  { %s2413_s1 = smov 256   ;;  %s2414_s13 = smov 16  }
  0x23   :  { %23 = dma.hbm_to_vmem [thread:$0]  %s2573_s0, 8192, %s18_s30, [#allocation3], %s2413_s1, %s2413_s1, %s2414_s13  }
  0x24   :  { %s2415_s16 = smov [#allocation7]   ;;  %s2359_s20 = scalar_lea.hbm %s2576_s3, 4096 }
  0x25   :  { %s43_s17 = sshll.u32 %s2415_s16, 4  ;;  %p2360_p2 = scmp.ne.s32.totalorder %s2576_s3, %s2359_s20  ;;  %s44_s17 = int_to_ptr.vmem [resolvable:$true] %s43_s17 }
  0x26   :  { %p2363_p3 = scmp.lt.u32.totalorder %s2359_s20, %s2576_s3 }
  0x28   :  { %p2365_p4 = pnand %p2363_p3, %p2360_p2 }
  0x2a   :  { %2368 = shalt.err (!%p2365_p4)
}
  0x2b   :  { %s2369_s27 = scalar_lea.vmem %s44_s17, 4096  ;;  %p2374_p6 = scmp.lt.s32.totalorder %s44_s17, %s44_s17 }
  0x2c   :  { %p2370_p5 = scmp.ne.s32.totalorder %s44_s17, %s2369_s27  ;;  %p2375_p7 = scmp.lt.s32.totalorder %s2369_s27, %s2369_s27 }
  0x2e   :  { %p2376_p8 = por %p2375_p7, %p2374_p6 }
  0x30   :  { %p2377_p9 = pnand %p2376_p8, %p2370_p5 }
  0x32   :  { %2380 = shalt.err (!%p2377_p9)
}
  0x33   :  { %49 = dma.hbm_to_vmem [thread:$0]  %s2576_s3, 4096, %s44_s17, [#allocation6], %s2410_s25, %s2410_s25, %s2411_s26  }
  0x34   :  { %2403 = dma.done.wait [#allocation3], 8192  }
  0x35   :  { %2404 = vsyncadd [#allocation3], 4294959104 }
  0x36   :  { %2405 = dma.done.wait [#allocation6], 12288  }
  0x37   :  { %2406 = vsyncadd [#allocation6], 4294955008  ;;  %v2123_v0 = vld [vmem:[#allocation5 + $0x4] ss:$8 sps:$4 sm:$0xff]   ;;  %v2127_v2 = vld [vmem:[#allocation5] ss:$8 sps:$4 sm:$0xff]  }
  0x38   :  { %v2125_v1 = vld [vmem:[#allocation5 + $0x104] ss:$8 sps:$4 sm:$0xff]   ;;  %959 = vmatprep.subr.bf16.mxu1 %v2123_v0  ;;  %v2128_v3 = vld [vmem:[#allocation5 + $0x100] ss:$8 sps:$4 sm:$0xff]   ;;  %v2129_v4 = vld [vmem:[#allocation5 + $0x14] ss:$8 sps:$4 sm:$0xff]  }
  0x39   :  { %1152 = vmatprep.subr.bf16.mxu0 %v2125_v1  ;;  %960 = vmatpush1.bf16.msra.mxu1 %v2127_v2  ;;  %v2131_v5 = vld [vmem:[#allocation5 + $0x114] ss:$8 sps:$4 sm:$0xff]   ;;  %v2133_v6 = vld [vmem:[#allocation5 + $0x10] ss:$8 sps:$4 sm:$0xff]   ;;  %v2135_v8 = vld [vmem:[#allocation5 + $0x24] ss:$8 sps:$4 sm:$0xff]  }
  0x3a   :  { %1153 = vmatpush1.bf16.msra.mxu0 %v2128_v3  ;;  %961 = vmatprep.subr.bf16.mxu1 %v2129_v4  ;;  %v2134_v7 = vld [vmem:[#allocation5 + $0x110] ss:$8 sps:$4 sm:$0xff]   ;;  %v2137_v9 = vld [vmem:[#allocation5 + $0x124] ss:$8 sps:$4 sm:$0xff]   ;;  %v2139_v10 = vld [vmem:[#allocation5 + $0x20] ss:$8 sps:$4 sm:$0xff]  }
  0x3b   :  { %1154 = vmatprep.subr.bf16.mxu0 %v2131_v5  ;;  %v2140_v11 = vld [vmem:[#allocation5 + $0x120] ss:$8 sps:$4 sm:$0xff]   ;;  %v2141_v12 = vld [vmem:[#allocation5 + $0x34] ss:$8 sps:$4 sm:$0xff]   ;;  %v2145_v14 = vld [vmem:[#allocation5 + $0x30] ss:$8 sps:$4 sm:$0xff]  }
  0x3c   :  { %v2143_v13 = vld [vmem:[#allocation5 + $0x134] ss:$8 sps:$4 sm:$0xff]   ;;  %v2146_v15 = vld [vmem:[#allocation5 + $0x130] ss:$8 sps:$4 sm:$0xff]   ;;  %v2147_v16 = vld [vmem:[#allocation5 + $0x44] ss:$8 sps:$4 sm:$0xff]  }
  0x3d   :  { %962 = vmatpush1.bf16.msra.mxu1 %v2133_v6  ;;  %v2149_v17 = vld [vmem:[#allocation5 + $0x144] ss:$8 sps:$4 sm:$0xff]   ;;  %v2151_v18 = vld [vmem:[#allocation5 + $0x40] ss:$8 sps:$4 sm:$0xff]   ;;  %v2153_v20 = vld [vmem:[#allocation5 + $0x54] ss:$8 sps:$4 sm:$0xff]  }
  0x3e   :  { %1155 = vmatpush1.bf16.msra.mxu0 %v2134_v7  ;;  %963 = vmatprep.subr.bf16.mxu1 %v2135_v8  ;;  %v2152_v19 = vld [vmem:[#allocation5 + $0x140] ss:$8 sps:$4 sm:$0xff]   ;;  %v2155_v21 = vld [vmem:[#allocation5 + $0x154] ss:$8 sps:$4 sm:$0xff]   ;;  %v2157_v22 = vld [vmem:[#allocation5 + $0x50] ss:$8 sps:$4 sm:$0xff]  }
  0x3f   :  { %1156 = vmatprep.subr.bf16.mxu0 %v2137_v9  ;;  %v2158_v23 = vld [vmem:[#allocation5 + $0x150] ss:$8 sps:$4 sm:$0xff]   ;;  %v2159_v24 = vld [vmem:[#allocation5 + $0x64] ss:$8 sps:$4 sm:$0xff]   ;;  %v2163_v26 = vld [vmem:[#allocation5 + $0x60] ss:$8 sps:$4 sm:$0xff]  }
  0x40   :  { %v2161_v25 = vld [vmem:[#allocation5 + $0x164] ss:$8 sps:$4 sm:$0xff]   ;;  %v2164_v27 = vld [vmem:[#allocation5 + $0x160] ss:$8 sps:$4 sm:$0xff]   ;;  %v2165_v28 = vld [vmem:[#allocation5 + $0x74] ss:$8 sps:$4 sm:$0xff]  }
  0x41   :  { %964 = vmatpush1.bf16.msra.mxu1 %v2139_v10  ;;  %v2167_v29 = vld [vmem:[#allocation5 + $0x174] ss:$8 sps:$4 sm:$0xff]   ;;  %v2169_v30 = vld [vmem:[#allocation5 + $0x70] ss:$8 sps:$4 sm:$0xff]   ;;  %v2171_v32 = vld [vmem:[#allocation5 + $0x84] ss:$8 sps:$4 sm:$0xff]  }
  0x42   :  { %1157 = vmatpush1.bf16.msra.mxu0 %v2140_v11  ;;  %965 = vmatprep.subr.bf16.mxu1 %v2141_v12  ;;  %v2170_v31 = vld [vmem:[#allocation5 + $0x170] ss:$8 sps:$4 sm:$0xff]   ;;  %v2173_v33 = vld [vmem:[#allocation5 + $0x184] ss:$8 sps:$4 sm:$0xff]   ;;  %v2175_v34 = vld [vmem:[#allocation5 + $0x80] ss:$8 sps:$4 sm:$0xff]  }
  0x43   :  { %1158 = vmatprep.subr.bf16.mxu0 %v2143_v13  ;;  %v2176_v35 = vld [vmem:[#allocation5 + $0x180] ss:$8 sps:$4 sm:$0xff]   ;;  %v2177_v36 = vld [vmem:[#allocation5 + $0x94] ss:$8 sps:$4 sm:$0xff]   ;;  %v2181_v38 = vld [vmem:[#allocation5 + $0x90] ss:$8 sps:$4 sm:$0xff]  }
  0x44   :  { %v2179_v37 = vld [vmem:[#allocation5 + $0x194] ss:$8 sps:$4 sm:$0xff]   ;;  %v2182_v39 = vld [vmem:[#allocation5 + $0x190] ss:$8 sps:$4 sm:$0xff]   ;;  %v2183_v40 = vld [vmem:[#allocation5 + $0xa4] ss:$8 sps:$4 sm:$0xff]  }
  0x45   :  { %966 = vmatpush1.bf16.msra.mxu1 %v2145_v14  ;;  %v2185_v41 = vld [vmem:[#allocation5 + $0x1a4] ss:$8 sps:$4 sm:$0xff]   ;;  %v2187_v42 = vld [vmem:[#allocation5 + $0xa0] ss:$8 sps:$4 sm:$0xff]   ;;  %v2189_v44 = vld [vmem:[#allocation5 + $0xb4] ss:$8 sps:$4 sm:$0xff]  }
  0x46   :  { %1159 = vmatpush1.bf16.msra.mxu0 %v2146_v15  ;;  %967 = vmatprep.subr.bf16.mxu1 %v2147_v16  ;;  %v2188_v43 = vld [vmem:[#allocation5 + $0x1a0] ss:$8 sps:$4 sm:$0xff]   ;;  %v2191_v45 = vld [vmem:[#allocation5 + $0x1b4] ss:$8 sps:$4 sm:$0xff]   ;;  %v2193_v46 = vld [vmem:[#allocation5 + $0xb0] ss:$8 sps:$4 sm:$0xff]  }
  0x47   :  { %1160 = vmatprep.subr.bf16.mxu0 %v2149_v17  ;;  %v2194_v47 = vld [vmem:[#allocation5 + $0x1b0] ss:$8 sps:$4 sm:$0xff]   ;;  %v2195_v48 = vld [vmem:[#allocation5 + $0xc4] ss:$8 sps:$4 sm:$0xff]   ;;  %v2199_v52 = vld [vmem:[#allocation5 + $0xc0] ss:$8 sps:$4 sm:$0xff]  }
  0x48   :  { %v2221_v49 = vld [vmem:[#allocation2 + $0x4] ss:$16 sps:$4 sm:$0xff]   ;;  %v2224_v51 = vld [vmem:[#allocation2 + $0xc] ss:$16 sps:$4 sm:$0xff]   ;;  %v2200_v53 = vld [vmem:[#allocation5 + $0x1c0] ss:$8 sps:$4 sm:$0xff]  }
  0x49   :  { %968 = vmatpush1.bf16.msra.mxu1 %v2151_v18  ;;  %v2197_v50 = vld [vmem:[#allocation5 + $0x1c4] ss:$8 sps:$4 sm:$0xff]   ;;  %991 = vmatprep.mubr.bf16.mxu1 %v2221_v49  ;;  %v2201_v54 = vld [vmem:[#allocation5 + $0xd4] ss:$8 sps:$4 sm:$0xff]   ;;  %v2205_v56 = vld [vmem:[#allocation5 + $0xd0] ss:$8 sps:$4 sm:$0xff]  }
  0x4a   :  { %1161 = vmatpush1.bf16.msra.mxu0 %v2152_v19  ;;  %969 = vmatprep.subr.bf16.mxu1 %v2153_v20  ;;  %v2203_v55 = vld [vmem:[#allocation5 + $0x1d4] ss:$8 sps:$4 sm:$0xff]   ;;  %v2206_v57 = vld [vmem:[#allocation5 + $0x1d0] ss:$8 sps:$4 sm:$0xff]   ;;  %v2207_v58 = vld [vmem:[#allocation5 + $0xe4] ss:$8 sps:$4 sm:$0xff]  }
  0x4b   :  { %1162 = vmatprep.subr.bf16.mxu0 %v2155_v21  ;;  %1184 = vmatprep.mubr.bf16.mxu0 %v2224_v51  ;;  %v2209_v59 = vld [vmem:[#allocation5 + $0x1e4] ss:$8 sps:$4 sm:$0xff]   ;;  %v2211_v60 = vld [vmem:[#allocation5 + $0xe0] ss:$8 sps:$4 sm:$0xff]   ;;  %v2213_v62 = vld [vmem:[#allocation5 + $0xf4] ss:$8 sps:$4 sm:$0xff]  }
  0x4c   :  { %v2212_v61 = vld [vmem:[#allocation5 + $0x1e0] ss:$8 sps:$4 sm:$0xff]   ;;  %v2215_v63 = vld [vmem:[#allocation5 + $0x1f4] ss:$8 sps:$4 sm:$0xff]   ;;  %v2217_v0 = vld [vmem:[#allocation5 + $0xf0] ss:$8 sps:$4 sm:$0xff]  }
  0x4d   :  { %970 = vmatpush1.bf16.msra.mxu1 %v2157_v22  ;;  %v2218_v1 = vld [vmem:[#allocation5 + $0x1f0] ss:$8 sps:$4 sm:$0xff]   ;;  %v2225_v4 = vld [vmem:[#allocation2 + $0x24] ss:$16 sps:$4 sm:$0xff]   ;;  %v2227_v5 = vld [vmem:[#allocation2 + $0x2c] ss:$16 sps:$4 sm:$0xff]  }
  0x4e   :  { %1163 = vmatpush1.bf16.msra.mxu0 %v2158_v23  ;;  %971 = vmatprep.subr.bf16.mxu1 %v2159_v24  ;;  %v2219_v2 = vld [vmem:[#allocation2] ss:$16 sps:$4 sm:$0xff]   ;;  %v2222_v3 = vld [vmem:[#allocation2 + $0x8] ss:$16 sps:$4 sm:$0xff]   ;;  %v2231_v8 = vld [vmem:[#allocation2 + $0x44] ss:$16 sps:$4 sm:$0xff]  }
  0x4f   :  { %1164 = vmatprep.subr.bf16.mxu0 %v2161_v25  ;;  %v2229_v6 = vld [vmem:[#allocation2 + $0x20] ss:$16 sps:$4 sm:$0xff]   ;;  %v2230_v7 = vld [vmem:[#allocation2 + $0x28] ss:$16 sps:$4 sm:$0xff]   ;;  %v2233_v9 = vld [vmem:[#allocation2 + $0x4c] ss:$16 sps:$4 sm:$0xff]  }
  0x50   :  { %v2235_v10 = vld [vmem:[#allocation2 + $0x40] ss:$16 sps:$4 sm:$0xff]   ;;  %v2236_v11 = vld [vmem:[#allocation2 + $0x48] ss:$16 sps:$4 sm:$0xff]   ;;  %v2237_v12 = vld [vmem:[#allocation2 + $0x64] ss:$16 sps:$4 sm:$0xff]  }
  0x51   :  { %972 = vmatpush1.bf16.msra.mxu1 %v2163_v26  ;;  %v2239_v13 = vld [vmem:[#allocation2 + $0x6c] ss:$16 sps:$4 sm:$0xff]   ;;  %v2241_v14 = vld [vmem:[#allocation2 + $0x60] ss:$16 sps:$4 sm:$0xff]   ;;  %v2242_v15 = vld [vmem:[#allocation2 + $0x68] ss:$16 sps:$4 sm:$0xff]  }
  0x52   :  { %1165 = vmatpush1.bf16.msra.mxu0 %v2164_v27  ;;  %973 = vmatprep.subr.bf16.mxu1 %v2165_v28  ;;  %v2243_v16 = vld [vmem:[#allocation2 + $0x84] ss:$16 sps:$4 sm:$0xff]   ;;  %v2245_v17 = vld [vmem:[#allocation2 + $0x8c] ss:$16 sps:$4 sm:$0xff]   ;;  %v2247_v18 = vld [vmem:[#allocation2 + $0x80] ss:$16 sps:$4 sm:$0xff]  }
  0x53   :  { %1166 = vmatprep.subr.bf16.mxu0 %v2167_v29  ;;  %v2248_v19 = vld [vmem:[#allocation2 + $0x88] ss:$16 sps:$4 sm:$0xff]   ;;  %v2249_v20 = vld [vmem:[#allocation2 + $0xa4] ss:$16 sps:$4 sm:$0xff]   ;;  %v2251_v21 = vld [vmem:[#allocation2 + $0xac] ss:$16 sps:$4 sm:$0xff]  }
  0x54   :  { %v2253_v22 = vld [vmem:[#allocation2 + $0xa0] ss:$16 sps:$4 sm:$0xff]   ;;  %v2254_v23 = vld [vmem:[#allocation2 + $0xa8] ss:$16 sps:$4 sm:$0xff]   ;;  %v2255_v24 = vld [vmem:[#allocation2 + $0xc4] ss:$16 sps:$4 sm:$0xff]  }
  0x55   :  { %974 = vmatpush1.bf16.msra.mxu1 %v2169_v30  ;;  %v2257_v25 = vld [vmem:[#allocation2 + $0xcc] ss:$16 sps:$4 sm:$0xff]   ;;  %v2259_v26 = vld [vmem:[#allocation2 + $0xc0] ss:$16 sps:$4 sm:$0xff]   ;;  %v2260_v27 = vld [vmem:[#allocation2 + $0xc8] ss:$16 sps:$4 sm:$0xff]  }
  0x56   :  { %1167 = vmatpush1.bf16.msra.mxu0 %v2170_v31  ;;  %975 = vmatprep.subr.bf16.mxu1 %v2171_v32  ;;  %v2261_v28 = vld [vmem:[#allocation2 + $0xe4] ss:$16 sps:$4 sm:$0xff]   ;;  %v2263_v29 = vld [vmem:[#allocation2 + $0xec] ss:$16 sps:$4 sm:$0xff]   ;;  %v2265_v30 = vld [vmem:[#allocation2 + $0xe0] ss:$16 sps:$4 sm:$0xff]  }
  0x57   :  { %1168 = vmatprep.subr.bf16.mxu0 %v2173_v33  ;;  %v2266_v31 = vld [vmem:[#allocation2 + $0xe8] ss:$16 sps:$4 sm:$0xff]   ;;  %v2267_v32 = vld [vmem:[#allocation2 + $0x104] ss:$16 sps:$4 sm:$0xff]   ;;  %v2269_v33 = vld [vmem:[#allocation2 + $0x10c] ss:$16 sps:$4 sm:$0xff]  }
  0x58   :  { %v2293_v49 = vld [vmem:[#allocation2 + $0x18c] ss:$16 sps:$4 sm:$0xff]   ;;  %v2296_v51 = vld [vmem:[#allocation2 + $0x188] ss:$16 sps:$4 sm:$0xff]  }
  0x59   :  { %976 = vmatpush1.bf16.msra.mxu1 %v2175_v34  ;;  %v2271_v34 = vld [vmem:[#allocation2 + $0x100] ss:$16 sps:$4 sm:$0xff]  }
  0x5a   :  { %1169 = vmatpush1.bf16.msra.mxu0 %v2176_v35  ;;  %977 = vmatprep.subr.bf16.mxu1 %v2177_v36  ;;  %v2272_v35 = vld [vmem:[#allocation2 + $0x108] ss:$16 sps:$4 sm:$0xff]   ;;  %v2273_v36 = vld [vmem:[#allocation2 + $0x124] ss:$16 sps:$4 sm:$0xff]  }
  0x5b   :  { %1170 = vmatprep.subr.bf16.mxu0 %v2179_v37  ;;  %v2275_v37 = vld [vmem:[#allocation2 + $0x12c] ss:$16 sps:$4 sm:$0xff]  }
  0x5d   :  { %978 = vmatpush1.bf16.msra.mxu1 %v2181_v38  ;;  %v2277_v38 = vld [vmem:[#allocation2 + $0x120] ss:$16 sps:$4 sm:$0xff]  }
  0x5e   :  { %1171 = vmatpush1.bf16.msra.mxu0 %v2182_v39  ;;  %979 = vmatprep.subr.bf16.mxu1 %v2183_v40  ;;  %v2278_v39 = vld [vmem:[#allocation2 + $0x128] ss:$16 sps:$4 sm:$0xff]   ;;  %v2279_v40 = vld [vmem:[#allocation2 + $0x144] ss:$16 sps:$4 sm:$0xff]  }
  0x5f   :  { %1172 = vmatprep.subr.bf16.mxu0 %v2185_v41  ;;  %v2281_v41 = vld [vmem:[#allocation2 + $0x14c] ss:$16 sps:$4 sm:$0xff]  }
  0x61   :  { %980 = vmatpush1.bf16.msra.mxu1 %v2187_v42  ;;  %v2283_v42 = vld [vmem:[#allocation2 + $0x140] ss:$16 sps:$4 sm:$0xff]  }
  0x62   :  { %1173 = vmatpush1.bf16.msra.mxu0 %v2188_v43  ;;  %981 = vmatprep.subr.bf16.mxu1 %v2189_v44  ;;  %v2284_v43 = vld [vmem:[#allocation2 + $0x148] ss:$16 sps:$4 sm:$0xff]   ;;  %v2285_v44 = vld [vmem:[#allocation2 + $0x164] ss:$16 sps:$4 sm:$0xff]  }
  0x63   :  { %1174 = vmatprep.subr.bf16.mxu0 %v2191_v45  ;;  %v2287_v45 = vld [vmem:[#allocation2 + $0x16c] ss:$16 sps:$4 sm:$0xff]  }
  0x65   :  { %982 = vmatpush1.bf16.msra.mxu1 %v2193_v46  ;;  %v2289_v46 = vld [vmem:[#allocation2 + $0x160] ss:$16 sps:$4 sm:$0xff]  }
  0x66   :  { %1175 = vmatpush1.bf16.msra.mxu0 %v2194_v47  ;;  %983 = vmatprep.subr.bf16.mxu1 %v2195_v48  ;;  %v2290_v47 = vld [vmem:[#allocation2 + $0x168] ss:$16 sps:$4 sm:$0xff]   ;;  %v2291_v48 = vld [vmem:[#allocation2 + $0x184] ss:$16 sps:$4 sm:$0xff]  }
  0x67   :  { %1176 = vmatprep.subr.bf16.mxu0 %v2197_v50  ;;  %v2295_v50 = vld [vmem:[#allocation2 + $0x180] ss:$16 sps:$4 sm:$0xff]  }
  0x69   :  { %984 = vmatpush1.bf16.msra.mxu1 %v2199_v52  ;;  %v2297_v52 = vld [vmem:[#allocation2 + $0x1a4] ss:$16 sps:$4 sm:$0xff]  }
  0x6a   :  { %1177 = vmatpush1.bf16.msra.mxu0 %v2200_v53  ;;  %985 = vmatprep.subr.bf16.mxu1 %v2201_v54  ;;  %v2299_v53 = vld [vmem:[#allocation2 + $0x1ac] ss:$16 sps:$4 sm:$0xff]   ;;  %v2301_v54 = vld [vmem:[#allocation2 + $0x1a0] ss:$16 sps:$4 sm:$0xff]  }
  0x6b   :  { %1178 = vmatprep.subr.bf16.mxu0 %v2203_v55  ;;  %v2302_v55 = vld [vmem:[#allocation2 + $0x1a8] ss:$16 sps:$4 sm:$0xff]  }
  0x6d   :  { %986 = vmatpush1.bf16.msra.mxu1 %v2205_v56  ;;  %v2303_v56 = vld [vmem:[#allocation2 + $0x1c4] ss:$16 sps:$4 sm:$0xff]  }
  0x6e   :  { %1179 = vmatpush1.bf16.msra.mxu0 %v2206_v57  ;;  %987 = vmatprep.subr.bf16.mxu1 %v2207_v58  ;;  %v2305_v57 = vld [vmem:[#allocation2 + $0x1cc] ss:$16 sps:$4 sm:$0xff]   ;;  %v2307_v58 = vld [vmem:[#allocation2 + $0x1c0] ss:$16 sps:$4 sm:$0xff]  }
  0x6f   :  { %1180 = vmatprep.subr.bf16.mxu0 %v2209_v59  ;;  %v2308_v59 = vld [vmem:[#allocation2 + $0x1c8] ss:$16 sps:$4 sm:$0xff]  }
  0x71   :  { %988 = vmatpush1.bf16.msra.mxu1 %v2211_v60  ;;  %v2309_v60 = vld [vmem:[#allocation2 + $0x1e4] ss:$16 sps:$4 sm:$0xff]  }
  0x72   :  { %1181 = vmatpush1.bf16.msra.mxu0 %v2212_v61  ;;  %989 = vmatprep.subr.bf16.mxu1 %v2213_v62  ;;  %v2311_v61 = vld [vmem:[#allocation2 + $0x1ec] ss:$16 sps:$4 sm:$0xff]   ;;  %v2313_v62 = vld [vmem:[#allocation2 + $0x1e0] ss:$16 sps:$4 sm:$0xff]  }
  0x73   :  { %1182 = vmatprep.subr.bf16.mxu0 %v2215_v63  ;;  %v2314_v63 = vld [vmem:[#allocation2 + $0x1e8] ss:$16 sps:$4 sm:$0xff]  }
  0x75   :  { %990 = vmatpush1.bf16.msra.mxu1 %v2217_v0  ;;  %v1542_v0 = vlaneseq }
  0x76   :  { %1183 = vmatpush1.bf16.msra.mxu0 %v2218_v1 }
  0x77   :  { %v1543_v1 = vshrl.u32 %v1542_v0, 7 }
  0x78   :  { %992 = vmatmul.mubr.bf16.vlgmr.msra.gmra.mrb[0].mxu1 %v2219_v2 }
  0x79   :  { %1185 = vmatmul.mubr.bf16.vlgmr.msra.gmra.mrb[0].mxu0 %v2222_v3  ;;  %1001 = vmatprep.mubr.bf16.mxu1 %v2225_v4  ;;  %v1544_v2 = vsub.s32 0, %v1543_v1  ;;  %v1540_v3 = vld [vmem:[%s2575_s2] sm:$0x3]  ;;  %v1548_v4 = vsub.s32 1, %v1543_v1  ;;  %s2416_s2 = smov [#allocation8]  }
  0x7a   :  { %1194 = vmatprep.mubr.bf16.mxu0 %v2227_v5  ;;  %s1909_s26 = sshll.u32 %s2416_s2, 4  ;;  %s1910_s26 = int_to_ptr.vmem [resolvable:$true] %s1909_s26 }
  0x7b   :  { %s2381_s29 = scalar_lea.vmem %s1910_s26, 8192  ;;  %p2386_p11 = scmp.lt.s32.totalorder %s1910_s26, %s1910_s26 }
  0x7c   :  { %p2382_p10 = scmp.ne.s32.totalorder %s1910_s26, %s2381_s29  ;;  %p2387_p12 = scmp.lt.s32.totalorder %s2381_s29, %s2381_s29 }
  0x7e   :  { %p2388_p13 = por %p2387_p12, %p2386_p11 }
  0x80   :  { %1002 = vmatmul.mubr.bf16.gmra.mrb[4].mxu1 %v2229_v6  ;;  %p2389_p0 = pnand %p2388_p13, %p2382_p10 }
  0x81   :  { %1195 = vmatmul.mubr.bf16.gmra.mrb[4].mxu0 %v2230_v7  ;;  %1011 = vmatprep.mubr.bf16.mxu1 %v2231_v8  ;;  %v2490_v8 = vrot.slane %v1540_v3, %v1544_v2 }
  0x82   :  { %1204 = vmatprep.mubr.bf16.mxu0 %v2233_v9 }
  0x88   :  { %1012 = vmatmul.mubr.bf16.gmra.mrb[8].mxu1 %v2235_v10 }
  0x89   :  { %1205 = vmatmul.mubr.bf16.gmra.mrb[8].mxu0 %v2236_v11  ;;  %1021 = vmatprep.mubr.bf16.mxu1 %v2237_v12  ;;  %v1680_v11 = vld [vmem:[#allocation7] sm:$0xff] }
  0x8a   :  { %1214 = vmatprep.mubr.bf16.mxu0 %v2239_v13  ;;  %v2492_v13 = vrot.slane %v1540_v3, %v1548_v4 }
  0x90   :  { %1022 = vmatmul.mubr.bf16.gmra.mrb[12].mxu1 %v2241_v14 }
  0x91   :  { %1215 = vmatmul.mubr.bf16.gmra.mrb[12].mxu0 %v2242_v15  ;;  %1031 = vmatprep.mubr.bf16.mxu1 %v2243_v16 }
  0x92   :  { %1224 = vmatprep.mubr.bf16.mxu0 %v2245_v17 }
  0x98   :  { %1032 = vmatmul.mubr.bf16.gmra.mrb[16].mxu1 %v2247_v18 }
  0x99   :  { %1225 = vmatmul.mubr.bf16.gmra.mrb[16].mxu0 %v2248_v19  ;;  %1041 = vmatprep.mubr.bf16.mxu1 %v2249_v20  ;;  %v1681_v19 = vld [vmem:[#allocation7 + $0x8] sm:$0xff] }
  0x9a   :  { %1234 = vmatprep.mubr.bf16.mxu0 %v2251_v21 }
  0xa0   :  { %1042 = vmatmul.mubr.bf16.gmra.mrb[20].mxu1 %v2253_v22  ;;  %v1712_v22 = vunpack.c.l.bf16 %v1680_v11 }
  0xa1   :  { %1235 = vmatmul.mubr.bf16.gmra.mrb[20].mxu0 %v2254_v23  ;;  %1051 = vmatprep.mubr.bf16.mxu1 %v2255_v24  ;;  %v1713_v24 = vunpack.c.h.bf16 %v1680_v11 }
  0xa2   :  { %1244 = vmatprep.mubr.bf16.mxu0 %v2257_v25 }
  0xa8   :  { %1052 = vmatmul.mubr.bf16.gmra.mrb[24].mxu1 %v2259_v26 }
  0xa9   :  { %1245 = vmatmul.mubr.bf16.gmra.mrb[24].mxu0 %v2260_v27  ;;  %1061 = vmatprep.mubr.bf16.mxu1 %v2261_v28  ;;  %v1714_v27 = vunpack.c.l.bf16 %v1681_v19 }
  0xaa   :  { %1254 = vmatprep.mubr.bf16.mxu0 %v2263_v29 }
  0xb0   :  { %1062 = vmatmul.mubr.bf16.gmra.mrb[28].mxu1 %v2265_v30  ;;  %v1715_v30 = vunpack.c.h.bf16 %v1681_v19 }
  0xb1   :  { %1255 = vmatmul.mubr.bf16.gmra.mrb[28].mxu0 %v2266_v31  ;;  %1071 = vmatprep.mubr.bf16.mxu1 %v2267_v32 }
  0xb2   :  { %1264 = vmatprep.mubr.bf16.mxu0 %v2269_v33 }
  0xb8   :  { %1072 = vmatmul.mubr.bf16.gmra.mrb[32].mxu1 %v2271_v34 }
  0xb9   :  { %1265 = vmatmul.mubr.bf16.gmra.mrb[32].mxu0 %v2272_v35  ;;  %1081 = vmatprep.mubr.bf16.mxu1 %v2273_v36 }
  0xba   :  { %1274 = vmatprep.mubr.bf16.mxu0 %v2275_v37 }
  0xc0   :  { %1082 = vmatmul.mubr.bf16.gmra.mrb[36].mxu1 %v2277_v38 }
  0xc1   :  { %1275 = vmatmul.mubr.bf16.gmra.mrb[36].mxu0 %v2278_v39  ;;  %1091 = vmatprep.mubr.bf16.mxu1 %v2279_v40  ;;  %v1682_v40 = vld [vmem:[#allocation7 + $0x10] sm:$0xff] }
  0xc2   :  { %1284 = vmatprep.mubr.bf16.mxu0 %v2281_v41 }
  0xc8   :  { %1092 = vmatmul.mubr.bf16.gmra.mrb[40].mxu1 %v2283_v42 }
  0xc9   :  { %1285 = vmatmul.mubr.bf16.gmra.mrb[40].mxu0 %v2284_v43  ;;  %1101 = vmatprep.mubr.bf16.mxu1 %v2285_v44 }
  0xca   :  { %1294 = vmatprep.mubr.bf16.mxu0 %v2287_v45 }
  0xd0   :  { %1102 = vmatmul.mubr.bf16.gmra.mrb[44].mxu1 %v2289_v46 }
  0xd1   :  { %1295 = vmatmul.mubr.bf16.gmra.mrb[44].mxu0 %v2290_v47  ;;  %1111 = vmatprep.mubr.bf16.mxu1 %v2291_v48 }
  0xd2   :  { %1304 = vmatprep.mubr.bf16.mxu0 %v2293_v49  ;;  %v1683_v49 = vld [vmem:[#allocation7 + $0x18] sm:$0xff] }
  0xd8   :  { %1112 = vmatmul.mubr.bf16.gmra.mrb[48].mxu1 %v2295_v50 }
  0xd9   :  { %1305 = vmatmul.mubr.bf16.gmra.mrb[48].mxu0 %v2296_v51  ;;  %1121 = vmatprep.mubr.bf16.mxu1 %v2297_v52  ;;  %v1716_v52 = vunpack.c.l.bf16 %v1682_v40 }
  0xda   :  { %1314 = vmatprep.mubr.bf16.mxu0 %v2299_v53 }
  0xe0   :  { %1122 = vmatmul.mubr.bf16.gmra.mrb[52].mxu1 %v2301_v54  ;;  %v1717_v54 = vunpack.c.h.bf16 %v1682_v40 }
  0xe1   :  { %1315 = vmatmul.mubr.bf16.gmra.mrb[52].mxu0 %v2302_v55  ;;  %1131 = vmatprep.mubr.bf16.mxu1 %v2303_v56 }
  0xe2   :  { %1324 = vmatprep.mubr.bf16.mxu0 %v2305_v57  ;;  %v1718_v57 = vunpack.c.l.bf16 %v1683_v49 }
  0xe8   :  { %1132 = vmatmul.mubr.bf16.gmra.mrb[56].mxu1 %v2307_v58 }
  0xe9   :  { %1325 = vmatmul.mubr.bf16.gmra.mrb[56].mxu0 %v2308_v59  ;;  %1141 = vmatprep.mubr.bf16.mxu1 %v2309_v60  ;;  %v1719_v60 = vunpack.c.h.bf16 %v1683_v49 }
  0xea   :  { %1334 = vmatprep.mubr.bf16.mxu0 %v2311_v61 }
  0xf0   :  { %1142 = vmatmul.mubr.bf16.gmra.mrb[60].mxu1 %v2313_v62 }
  0xf1   :  { %1335 = vmatmul.mubr.bf16.gmra.mrb[60].mxu0 %v2314_v63 }
 0x14b   :  { %v993_v5 = vpop.f32.mrb[0].mxu1 }
 0x14c   :  { %v1186_v6 = vpop.f32.mrb[0].mxu0  ;;  %v995_v9 = vpop.f32.mrb[1].mxu1 }
 0x14d   :  { %v1187_v7 = vadd.f32 %v1186_v6, %v993_v5  ;;  %v1188_v10 = vpop.f32.mrb[1].mxu0  ;;  %v997_v14 = vpop.f32.mrb[2].mxu1  ;;  %v1684_v6 = vld [vmem:[#allocation7 + $0x20] sm:$0xff] }
 0x14e   :  { %v1189_v12 = vadd.f32 %v1188_v10, %v995_v9  ;;  %v1190_v15 = vpop.f32.mrb[2].mxu0  ;;  %v999_v17 = vpop.f32.mrb[3].mxu1 }
 0x14f   :  { %v1191_v16 = vadd.f32 %v1190_v15, %v997_v14  ;;  %v1192_v18 = vpop.f32.mrb[3].mxu0  ;;  %v1552_v21 = vadd.f32 %v2490_v8, %v1187_v7 }
 0x150   :  { %v1193_v20 = vadd.f32 %v1192_v18, %v999_v17  ;;  %v1553_v23 = vadd.f32 %v2492_v13, %v1189_v12  ;;  %v1685_v17 = vld [vmem:[#allocation7 + $0x28] sm:$0xff] }
 0x151   :  { %v1616_v25 = vmax.f32 %v1552_v21, 0.0  ;;  %v1554_v26 = vadd.f32 %v2490_v8, %v1191_v16 }
 0x152   :  { %v1617_v28 = vmax.f32 %v1553_v23, 0.0  ;;  %v1555_v29 = vadd.f32 %v2492_v13, %v1193_v20  ;;  %v1720_v20 = vunpack.c.l.bf16 %v1684_v6 }
 0x153   :  { %v1003_v31 = vpop.f32.mrb[4].mxu1  ;;  %v1776_v33 = vmul.f32 %v1712_v22, %v1616_v25  ;;  %v1618_v34 = vmax.f32 %v1554_v26, 0.0  ;;  %v1721_v22 = vunpack.c.h.bf16 %v1684_v6  ;;  %v1722_v25 = vunpack.c.l.bf16 %v1685_v17 }
 0x154   :  { %v1196_v32 = vpop.f32.mrb[4].mxu0  ;;  %v1005_v36 = vpop.f32.mrb[5].mxu1  ;;  %v1777_v38 = vmul.f32 %v1713_v24, %v1617_v28  ;;  %v1619_v39 = vmax.f32 %v1555_v29, 0.0  ;;  %v1723_v28 = vunpack.c.h.bf16 %v1685_v17 }
 0x155   :  { %v1197_v35 = vadd.f32 %v1196_v32, %v1003_v31  ;;  %v1198_v37 = vpop.f32.mrb[5].mxu0  ;;  %v1007_v42 = vpop.f32.mrb[6].mxu1  ;;  %1840 = vst [vmem:[#allocation8] sm:$0xff] %v1776_v33  ;;  %v1778_v44 = vmul.f32 %v1714_v27, %v1618_v34 }
 0x156   :  { %v1199_v41 = vadd.f32 %v1198_v37, %v1005_v36  ;;  %v1200_v43 = vpop.f32.mrb[6].mxu0  ;;  %v1009_v46 = vpop.f32.mrb[7].mxu1  ;;  %1841 = vst [vmem:[#allocation8 + $0x8] sm:$0xff] %v1777_v38  ;;  %v1779_v48 = vmul.f32 %v1715_v30, %v1619_v39  ;;  %v1686_v38 = vld [vmem:[#allocation7 + $0x30] sm:$0xff] }
 0x157   :  { %v1201_v45 = vadd.f32 %v1200_v43, %v1007_v42  ;;  %v1202_v47 = vpop.f32.mrb[7].mxu0  ;;  %1842 = vst [vmem:[#allocation8 + $0x10] sm:$0xff] %v1778_v44  ;;  %v1556_v51 = vadd.f32 %v2490_v8, %v1197_v35 }
 0x158   :  { %v1203_v50 = vadd.f32 %v1202_v47, %v1009_v46  ;;  %1843 = vst [vmem:[#allocation8 + $0x18] sm:$0xff] %v1779_v48  ;;  %v1557_v53 = vadd.f32 %v2492_v13, %v1199_v41  ;;  %v1687_v47 = vld [vmem:[#allocation7 + $0x38] sm:$0xff] }
 0x159   :  { %v1620_v55 = vmax.f32 %v1556_v51, 0.0  ;;  %v1558_v56 = vadd.f32 %v2490_v8, %v1201_v45 }
 0x15a   :  { %v1621_v58 = vmax.f32 %v1557_v53, 0.0  ;;  %v1559_v59 = vadd.f32 %v2492_v13, %v1203_v50  ;;  %v1724_v50 = vunpack.c.l.bf16 %v1686_v38 }
 0x15b   :  { %v1013_v61 = vpop.f32.mrb[8].mxu1  ;;  %v1780_v63 = vmul.f32 %v1716_v52, %v1620_v55  ;;  %v1622_v0 = vmax.f32 %v1558_v56, 0.0  ;;  %v1725_v52 = vunpack.c.h.bf16 %v1686_v38  ;;  %v1726_v55 = vunpack.c.l.bf16 %v1687_v47 }
 0x15c   :  { %v1206_v62 = vpop.f32.mrb[8].mxu0  ;;  %v1015_v2 = vpop.f32.mrb[9].mxu1  ;;  %v1781_v4 = vmul.f32 %v1717_v54, %v1621_v58  ;;  %v1623_v5 = vmax.f32 %v1559_v59, 0.0  ;;  %v1727_v58 = vunpack.c.h.bf16 %v1687_v47 }
 0x15d   :  { %v1207_v1 = vadd.f32 %v1206_v62, %v1013_v61  ;;  %v1208_v3 = vpop.f32.mrb[9].mxu0  ;;  %v1017_v9 = vpop.f32.mrb[10].mxu1  ;;  %1844 = vst [vmem:[#allocation8 + $0x20] sm:$0xff] %v1780_v63  ;;  %v1782_v11 = vmul.f32 %v1718_v57, %v1622_v0 }
 0x15e   :  { %v1209_v7 = vadd.f32 %v1208_v3, %v1015_v2  ;;  %v1210_v10 = vpop.f32.mrb[10].mxu0  ;;  %v1019_v14 = vpop.f32.mrb[11].mxu1  ;;  %1845 = vst [vmem:[#allocation8 + $0x28] sm:$0xff] %v1781_v4  ;;  %v1783_v16 = vmul.f32 %v1719_v60, %v1623_v5  ;;  %v1688_v4 = vld [vmem:[#allocation7 + $0x40] sm:$0xff] }
 0x15f   :  { %v1211_v12 = vadd.f32 %v1210_v10, %v1017_v9  ;;  %v1212_v15 = vpop.f32.mrb[11].mxu0  ;;  %1846 = vst [vmem:[#allocation8 + $0x30] sm:$0xff] %v1782_v11  ;;  %v1560_v19 = vadd.f32 %v2490_v8, %v1207_v1 }
 0x160   :  { %v1213_v18 = vadd.f32 %v1212_v15, %v1019_v14  ;;  %1847 = vst [vmem:[#allocation8 + $0x38] sm:$0xff] %v1783_v16  ;;  %v1561_v21 = vadd.f32 %v2492_v13, %v1209_v7  ;;  %v1689_v15 = vld [vmem:[#allocation7 + $0x48] sm:$0xff] }
 0x161   :  { %v1624_v23 = vmax.f32 %v1560_v19, 0.0  ;;  %v1562_v24 = vadd.f32 %v2490_v8, %v1211_v12 }
 0x162   :  { %v1625_v26 = vmax.f32 %v1561_v21, 0.0  ;;  %v1563_v27 = vadd.f32 %v2492_v13, %v1213_v18  ;;  %v1728_v18 = vunpack.c.l.bf16 %v1688_v4 }
 0x163   :  { %v1023_v29 = vpop.f32.mrb[12].mxu1  ;;  %v1784_v31 = vmul.f32 %v1720_v20, %v1624_v23  ;;  %v1626_v32 = vmax.f32 %v1562_v24, 0.0  ;;  %v1729_v20 = vunpack.c.h.bf16 %v1688_v4  ;;  %v1730_v23 = vunpack.c.l.bf16 %v1689_v15 }
 0x164   :  { %v1216_v30 = vpop.f32.mrb[12].mxu0  ;;  %v1025_v34 = vpop.f32.mrb[13].mxu1  ;;  %v1785_v36 = vmul.f32 %v1721_v22, %v1625_v26  ;;  %v1627_v37 = vmax.f32 %v1563_v27, 0.0  ;;  %v1731_v26 = vunpack.c.h.bf16 %v1689_v15 }
 0x165   :  { %v1217_v33 = vadd.f32 %v1216_v30, %v1023_v29  ;;  %v1218_v35 = vpop.f32.mrb[13].mxu0  ;;  %v1027_v40 = vpop.f32.mrb[14].mxu1  ;;  %1848 = vst [vmem:[#allocation8 + $0x40] sm:$0xff] %v1784_v31  ;;  %v1786_v42 = vmul.f32 %v1722_v25, %v1626_v32 }
 0x166   :  { %v1219_v39 = vadd.f32 %v1218_v35, %v1025_v34  ;;  %v1220_v41 = vpop.f32.mrb[14].mxu0  ;;  %v1029_v44 = vpop.f32.mrb[15].mxu1  ;;  %1849 = vst [vmem:[#allocation8 + $0x48] sm:$0xff] %v1785_v36  ;;  %v1787_v46 = vmul.f32 %v1723_v28, %v1627_v37  ;;  %v1690_v36 = vld [vmem:[#allocation7 + $0x50] sm:$0xff] }
 0x167   :  { %v1221_v43 = vadd.f32 %v1220_v41, %v1027_v40  ;;  %v1222_v45 = vpop.f32.mrb[15].mxu0  ;;  %1850 = vst [vmem:[#allocation8 + $0x50] sm:$0xff] %v1786_v42  ;;  %v1564_v49 = vadd.f32 %v2490_v8, %v1217_v33 }
 0x168   :  { %v1223_v48 = vadd.f32 %v1222_v45, %v1029_v44  ;;  %1851 = vst [vmem:[#allocation8 + $0x58] sm:$0xff] %v1787_v46  ;;  %v1565_v51 = vadd.f32 %v2492_v13, %v1219_v39  ;;  %v1691_v45 = vld [vmem:[#allocation7 + $0x58] sm:$0xff] }
 0x169   :  { %v1628_v53 = vmax.f32 %v1564_v49, 0.0  ;;  %v1566_v54 = vadd.f32 %v2490_v8, %v1221_v43 }
 0x16a   :  { %v1629_v56 = vmax.f32 %v1565_v51, 0.0  ;;  %v1567_v57 = vadd.f32 %v2492_v13, %v1223_v48  ;;  %v1732_v48 = vunpack.c.l.bf16 %v1690_v36 }
 0x16b   :  { %v1033_v59 = vpop.f32.mrb[16].mxu1  ;;  %v1788_v61 = vmul.f32 %v1724_v50, %v1628_v53  ;;  %v1630_v62 = vmax.f32 %v1566_v54, 0.0  ;;  %v1733_v50 = vunpack.c.h.bf16 %v1690_v36  ;;  %v1734_v53 = vunpack.c.l.bf16 %v1691_v45 }
 0x16c   :  { %v1226_v60 = vpop.f32.mrb[16].mxu0  ;;  %v1035_v0 = vpop.f32.mrb[17].mxu1  ;;  %v1789_v2 = vmul.f32 %v1725_v52, %v1629_v56  ;;  %v1631_v3 = vmax.f32 %v1567_v57, 0.0  ;;  %v1735_v56 = vunpack.c.h.bf16 %v1691_v45 }
 0x16d   :  { %v1227_v63 = vadd.f32 %v1226_v60, %v1033_v59  ;;  %v1228_v1 = vpop.f32.mrb[17].mxu0  ;;  %v1037_v6 = vpop.f32.mrb[18].mxu1  ;;  %1852 = vst [vmem:[#allocation8 + $0x60] sm:$0xff] %v1788_v61  ;;  %v1790_v9 = vmul.f32 %v1726_v55, %v1630_v62 }
 0x16e   :  { %v1229_v5 = vadd.f32 %v1228_v1, %v1035_v0  ;;  %v1230_v7 = vpop.f32.mrb[18].mxu0  ;;  %v1039_v11 = vpop.f32.mrb[19].mxu1  ;;  %1853 = vst [vmem:[#allocation8 + $0x68] sm:$0xff] %v1789_v2  ;;  %v1791_v14 = vmul.f32 %v1727_v58, %v1631_v3  ;;  %v1692_v2 = vld [vmem:[#allocation7 + $0x60] sm:$0xff] }
 0x16f   :  { %v1231_v10 = vadd.f32 %v1230_v7, %v1037_v6  ;;  %v1232_v12 = vpop.f32.mrb[19].mxu0  ;;  %1854 = vst [vmem:[#allocation8 + $0x70] sm:$0xff] %v1790_v9  ;;  %v1568_v17 = vadd.f32 %v2490_v8, %v1227_v63 }
 0x170   :  { %v1233_v16 = vadd.f32 %v1232_v12, %v1039_v11  ;;  %1855 = vst [vmem:[#allocation8 + $0x78] sm:$0xff] %v1791_v14  ;;  %v1569_v19 = vadd.f32 %v2492_v13, %v1229_v5  ;;  %v1693_v12 = vld [vmem:[#allocation7 + $0x68] sm:$0xff] }
 0x171   :  { %v1632_v21 = vmax.f32 %v1568_v17, 0.0  ;;  %v1570_v22 = vadd.f32 %v2490_v8, %v1231_v10 }
 0x172   :  { %v1633_v24 = vmax.f32 %v1569_v19, 0.0  ;;  %v1571_v25 = vadd.f32 %v2492_v13, %v1233_v16  ;;  %v1736_v16 = vunpack.c.l.bf16 %v1692_v2 }
 0x173   :  { %v1043_v27 = vpop.f32.mrb[20].mxu1  ;;  %v1792_v29 = vmul.f32 %v1728_v18, %v1632_v21  ;;  %v1634_v30 = vmax.f32 %v1570_v22, 0.0  ;;  %v1737_v18 = vunpack.c.h.bf16 %v1692_v2  ;;  %v1738_v21 = vunpack.c.l.bf16 %v1693_v12 }
 0x174   :  { %v1236_v28 = vpop.f32.mrb[20].mxu0  ;;  %v1045_v32 = vpop.f32.mrb[21].mxu1  ;;  %v1793_v34 = vmul.f32 %v1729_v20, %v1633_v24  ;;  %v1635_v35 = vmax.f32 %v1571_v25, 0.0  ;;  %v1739_v24 = vunpack.c.h.bf16 %v1693_v12 }
 0x175   :  { %v1237_v31 = vadd.f32 %v1236_v28, %v1043_v27  ;;  %v1238_v33 = vpop.f32.mrb[21].mxu0  ;;  %v1047_v38 = vpop.f32.mrb[22].mxu1  ;;  %1856 = vst [vmem:[#allocation8 + $0x80] sm:$0xff] %v1792_v29  ;;  %v1794_v40 = vmul.f32 %v1730_v23, %v1634_v30 }
 0x176   :  { %v1239_v37 = vadd.f32 %v1238_v33, %v1045_v32  ;;  %v1240_v39 = vpop.f32.mrb[22].mxu0  ;;  %v1049_v42 = vpop.f32.mrb[23].mxu1  ;;  %1857 = vst [vmem:[#allocation8 + $0x88] sm:$0xff] %v1793_v34  ;;  %v1795_v44 = vmul.f32 %v1731_v26, %v1635_v35  ;;  %v1694_v34 = vld [vmem:[#allocation7 + $0x70] sm:$0xff] }
 0x177   :  { %v1241_v41 = vadd.f32 %v1240_v39, %v1047_v38  ;;  %v1242_v43 = vpop.f32.mrb[23].mxu0  ;;  %1858 = vst [vmem:[#allocation8 + $0x90] sm:$0xff] %v1794_v40  ;;  %v1572_v47 = vadd.f32 %v2490_v8, %v1237_v31 }
 0x178   :  { %v1243_v46 = vadd.f32 %v1242_v43, %v1049_v42  ;;  %1859 = vst [vmem:[#allocation8 + $0x98] sm:$0xff] %v1795_v44  ;;  %v1573_v49 = vadd.f32 %v2492_v13, %v1239_v37  ;;  %v1695_v43 = vld [vmem:[#allocation7 + $0x78] sm:$0xff] }
 0x179   :  { %v1636_v51 = vmax.f32 %v1572_v47, 0.0  ;;  %v1574_v52 = vadd.f32 %v2490_v8, %v1241_v41 }
 0x17a   :  { %v1637_v54 = vmax.f32 %v1573_v49, 0.0  ;;  %v1575_v55 = vadd.f32 %v2492_v13, %v1243_v46  ;;  %v1740_v46 = vunpack.c.l.bf16 %v1694_v34 }
 0x17b   :  { %v1053_v57 = vpop.f32.mrb[24].mxu1  ;;  %v1796_v59 = vmul.f32 %v1732_v48, %v1636_v51  ;;  %v1638_v60 = vmax.f32 %v1574_v52, 0.0  ;;  %v1741_v48 = vunpack.c.h.bf16 %v1694_v34  ;;  %v1742_v51 = vunpack.c.l.bf16 %v1695_v43 }
 0x17c   :  { %v1246_v58 = vpop.f32.mrb[24].mxu0  ;;  %v1055_v62 = vpop.f32.mrb[25].mxu1  ;;  %v1797_v0 = vmul.f32 %v1733_v50, %v1637_v54  ;;  %v1639_v1 = vmax.f32 %v1575_v55, 0.0  ;;  %v1743_v54 = vunpack.c.h.bf16 %v1695_v43 }
 0x17d   :  { %v1247_v61 = vadd.f32 %v1246_v58, %v1053_v57  ;;  %v1248_v63 = vpop.f32.mrb[25].mxu0  ;;  %v1057_v4 = vpop.f32.mrb[26].mxu1  ;;  %1860 = vst [vmem:[#allocation8 + $0xa0] sm:$0xff] %v1796_v59  ;;  %v1798_v6 = vmul.f32 %v1734_v53, %v1638_v60 }
 0x17e   :  { %v1249_v3 = vadd.f32 %v1248_v63, %v1055_v62  ;;  %v1250_v5 = vpop.f32.mrb[26].mxu0  ;;  %v1059_v9 = vpop.f32.mrb[27].mxu1  ;;  %1861 = vst [vmem:[#allocation8 + $0xa8] sm:$0xff] %v1797_v0  ;;  %v1799_v11 = vmul.f32 %v1735_v56, %v1639_v1  ;;  %v1696_v0 = vld [vmem:[#allocation7 + $0x80] sm:$0xff] }
 0x17f   :  { %v1251_v7 = vadd.f32 %v1250_v5, %v1057_v4  ;;  %v1252_v10 = vpop.f32.mrb[27].mxu0  ;;  %1862 = vst [vmem:[#allocation8 + $0xb0] sm:$0xff] %v1798_v6  ;;  %v1576_v15 = vadd.f32 %v2490_v8, %v1247_v61 }
 0x180   :  { %v1253_v14 = vadd.f32 %v1252_v10, %v1059_v9  ;;  %1863 = vst [vmem:[#allocation8 + $0xb8] sm:$0xff] %v1799_v11  ;;  %v1577_v17 = vadd.f32 %v2492_v13, %v1249_v3  ;;  %v1697_v10 = vld [vmem:[#allocation7 + $0x88] sm:$0xff] }
 0x181   :  { %v1640_v19 = vmax.f32 %v1576_v15, 0.0  ;;  %v1578_v20 = vadd.f32 %v2490_v8, %v1251_v7 }
 0x182   :  { %v1641_v22 = vmax.f32 %v1577_v17, 0.0  ;;  %v1579_v23 = vadd.f32 %v2492_v13, %v1253_v14  ;;  %v1744_v14 = vunpack.c.l.bf16 %v1696_v0 }
 0x183   :  { %v1063_v25 = vpop.f32.mrb[28].mxu1  ;;  %v1800_v27 = vmul.f32 %v1736_v16, %v1640_v19  ;;  %v1642_v28 = vmax.f32 %v1578_v20, 0.0  ;;  %v1745_v16 = vunpack.c.h.bf16 %v1696_v0  ;;  %v1746_v19 = vunpack.c.l.bf16 %v1697_v10 }
 0x184   :  { %v1256_v26 = vpop.f32.mrb[28].mxu0  ;;  %v1065_v30 = vpop.f32.mrb[29].mxu1  ;;  %v1801_v32 = vmul.f32 %v1737_v18, %v1641_v22  ;;  %v1643_v33 = vmax.f32 %v1579_v23, 0.0  ;;  %v1747_v22 = vunpack.c.h.bf16 %v1697_v10 }
 0x185   :  { %v1257_v29 = vadd.f32 %v1256_v26, %v1063_v25  ;;  %v1258_v31 = vpop.f32.mrb[29].mxu0  ;;  %v1067_v36 = vpop.f32.mrb[30].mxu1  ;;  %1864 = vst [vmem:[#allocation8 + $0xc0] sm:$0xff] %v1800_v27  ;;  %v1802_v38 = vmul.f32 %v1738_v21, %v1642_v28 }
 0x186   :  { %v1259_v35 = vadd.f32 %v1258_v31, %v1065_v30  ;;  %v1260_v37 = vpop.f32.mrb[30].mxu0  ;;  %v1069_v40 = vpop.f32.mrb[31].mxu1  ;;  %1865 = vst [vmem:[#allocation8 + $0xc8] sm:$0xff] %v1801_v32  ;;  %v1803_v42 = vmul.f32 %v1739_v24, %v1643_v33  ;;  %v1698_v32 = vld [vmem:[#allocation7 + $0x90] sm:$0xff] }
 0x187   :  { %v1261_v39 = vadd.f32 %v1260_v37, %v1067_v36  ;;  %v1262_v41 = vpop.f32.mrb[31].mxu0  ;;  %1866 = vst [vmem:[#allocation8 + $0xd0] sm:$0xff] %v1802_v38  ;;  %v1580_v45 = vadd.f32 %v2490_v8, %v1257_v29 }
 0x188   :  { %v1263_v44 = vadd.f32 %v1262_v41, %v1069_v40  ;;  %1867 = vst [vmem:[#allocation8 + $0xd8] sm:$0xff] %v1803_v42  ;;  %v1581_v47 = vadd.f32 %v2492_v13, %v1259_v35  ;;  %v1699_v41 = vld [vmem:[#allocation7 + $0x98] sm:$0xff] }
 0x189   :  { %v1644_v49 = vmax.f32 %v1580_v45, 0.0  ;;  %v1582_v50 = vadd.f32 %v2490_v8, %v1261_v39 }
 0x18a   :  { %v1645_v52 = vmax.f32 %v1581_v47, 0.0  ;;  %v1583_v53 = vadd.f32 %v2492_v13, %v1263_v44  ;;  %v1748_v44 = vunpack.c.l.bf16 %v1698_v32 }
 0x18b   :  { %v1073_v55 = vpop.f32.mrb[32].mxu1  ;;  %v1804_v57 = vmul.f32 %v1740_v46, %v1644_v49  ;;  %v1646_v58 = vmax.f32 %v1582_v50, 0.0  ;;  %v1749_v46 = vunpack.c.h.bf16 %v1698_v32  ;;  %v1750_v49 = vunpack.c.l.bf16 %v1699_v41 }
 0x18c   :  { %v1266_v56 = vpop.f32.mrb[32].mxu0  ;;  %v1075_v60 = vpop.f32.mrb[33].mxu1  ;;  %v1805_v62 = vmul.f32 %v1741_v48, %v1645_v52  ;;  %v1647_v63 = vmax.f32 %v1583_v53, 0.0  ;;  %v1751_v52 = vunpack.c.h.bf16 %v1699_v41 }
 0x18d   :  { %v1267_v59 = vadd.f32 %v1266_v56, %v1073_v55  ;;  %v1268_v61 = vpop.f32.mrb[33].mxu0  ;;  %v1077_v2 = vpop.f32.mrb[34].mxu1  ;;  %1868 = vst [vmem:[#allocation8 + $0xe0] sm:$0xff] %v1804_v57  ;;  %v1806_v4 = vmul.f32 %v1742_v51, %v1646_v58 }
 0x18e   :  { %v1269_v1 = vadd.f32 %v1268_v61, %v1075_v60  ;;  %v1270_v3 = vpop.f32.mrb[34].mxu0  ;;  %v1079_v6 = vpop.f32.mrb[35].mxu1  ;;  %1869 = vst [vmem:[#allocation8 + $0xe8] sm:$0xff] %v1805_v62  ;;  %v1807_v9 = vmul.f32 %v1743_v54, %v1647_v63  ;;  %v1700_v62 = vld [vmem:[#allocation7 + $0xa0] sm:$0xff] }
 0x18f   :  { %v1271_v5 = vadd.f32 %v1270_v3, %v1077_v2  ;;  %v1272_v7 = vpop.f32.mrb[35].mxu0  ;;  %1870 = vst [vmem:[#allocation8 + $0xf0] sm:$0xff] %v1806_v4  ;;  %v1584_v12 = vadd.f32 %v2490_v8, %v1267_v59 }
 0x190   :  { %v1273_v11 = vadd.f32 %v1272_v7, %v1079_v6  ;;  %1871 = vst [vmem:[#allocation8 + $0xf8] sm:$0xff] %v1807_v9  ;;  %v1585_v15 = vadd.f32 %v2492_v13, %v1269_v1  ;;  %v1701_v7 = vld [vmem:[#allocation7 + $0xa8] sm:$0xff] }
 0x191   :  { %v1648_v17 = vmax.f32 %v1584_v12, 0.0  ;;  %v1586_v18 = vadd.f32 %v2490_v8, %v1271_v5 }
 0x192   :  { %v1649_v20 = vmax.f32 %v1585_v15, 0.0  ;;  %v1587_v21 = vadd.f32 %v2492_v13, %v1273_v11  ;;  %v1752_v11 = vunpack.c.l.bf16 %v1700_v62 }
 0x193   :  { %v1083_v23 = vpop.f32.mrb[36].mxu1  ;;  %v1808_v25 = vmul.f32 %v1744_v14, %v1648_v17  ;;  %v1650_v26 = vmax.f32 %v1586_v18, 0.0  ;;  %v1753_v14 = vunpack.c.h.bf16 %v1700_v62  ;;  %v1754_v17 = vunpack.c.l.bf16 %v1701_v7 }
 0x194   :  { %v1276_v24 = vpop.f32.mrb[36].mxu0  ;;  %v1085_v28 = vpop.f32.mrb[37].mxu1  ;;  %v1809_v30 = vmul.f32 %v1745_v16, %v1649_v20  ;;  %v1651_v31 = vmax.f32 %v1587_v21, 0.0  ;;  %v1755_v20 = vunpack.c.h.bf16 %v1701_v7 }
 0x195   :  { %v1277_v27 = vadd.f32 %v1276_v24, %v1083_v23  ;;  %v1278_v29 = vpop.f32.mrb[37].mxu0  ;;  %v1087_v34 = vpop.f32.mrb[38].mxu1  ;;  %1872 = vst [vmem:[#allocation8 + $0x100] sm:$0xff] %v1808_v25  ;;  %v1810_v36 = vmul.f32 %v1746_v19, %v1650_v26 }
 0x196   :  { %v1279_v33 = vadd.f32 %v1278_v29, %v1085_v28  ;;  %v1280_v35 = vpop.f32.mrb[38].mxu0  ;;  %v1089_v38 = vpop.f32.mrb[39].mxu1  ;;  %1873 = vst [vmem:[#allocation8 + $0x108] sm:$0xff] %v1809_v30  ;;  %v1811_v40 = vmul.f32 %v1747_v22, %v1651_v31  ;;  %v1702_v30 = vld [vmem:[#allocation7 + $0xb0] sm:$0xff] }
 0x197   :  { %v1281_v37 = vadd.f32 %v1280_v35, %v1087_v34  ;;  %v1282_v39 = vpop.f32.mrb[39].mxu0  ;;  %1874 = vst [vmem:[#allocation8 + $0x110] sm:$0xff] %v1810_v36  ;;  %v1588_v43 = vadd.f32 %v2490_v8, %v1277_v27 }
 0x198   :  { %v1283_v42 = vadd.f32 %v1282_v39, %v1089_v38  ;;  %1875 = vst [vmem:[#allocation8 + $0x118] sm:$0xff] %v1811_v40  ;;  %v1589_v45 = vadd.f32 %v2492_v13, %v1279_v33  ;;  %v1703_v39 = vld [vmem:[#allocation7 + $0xb8] sm:$0xff] }
 0x199   :  { %v1652_v47 = vmax.f32 %v1588_v43, 0.0  ;;  %v1590_v48 = vadd.f32 %v2490_v8, %v1281_v37 }
 0x19a   :  { %v1653_v50 = vmax.f32 %v1589_v45, 0.0  ;;  %v1591_v51 = vadd.f32 %v2492_v13, %v1283_v42  ;;  %v1756_v42 = vunpack.c.l.bf16 %v1702_v30 }
 0x19b   :  { %v1093_v53 = vpop.f32.mrb[40].mxu1  ;;  %v1812_v55 = vmul.f32 %v1748_v44, %v1652_v47  ;;  %v1654_v56 = vmax.f32 %v1590_v48, 0.0  ;;  %v1757_v44 = vunpack.c.h.bf16 %v1702_v30  ;;  %v1758_v47 = vunpack.c.l.bf16 %v1703_v39 }
 0x19c   :  { %v1286_v54 = vpop.f32.mrb[40].mxu0  ;;  %v1095_v58 = vpop.f32.mrb[41].mxu1  ;;  %v1813_v60 = vmul.f32 %v1749_v46, %v1653_v50  ;;  %v1655_v61 = vmax.f32 %v1591_v51, 0.0  ;;  %v1759_v50 = vunpack.c.h.bf16 %v1703_v39 }
 0x19d   :  { %v1287_v57 = vadd.f32 %v1286_v54, %v1093_v53  ;;  %v1288_v59 = vpop.f32.mrb[41].mxu0  ;;  %v1097_v0 = vpop.f32.mrb[42].mxu1  ;;  %1876 = vst [vmem:[#allocation8 + $0x120] sm:$0xff] %v1812_v55  ;;  %v1814_v2 = vmul.f32 %v1750_v49, %v1654_v56 }
 0x19e   :  { %v1289_v63 = vadd.f32 %v1288_v59, %v1095_v58  ;;  %v1290_v1 = vpop.f32.mrb[42].mxu0  ;;  %v1099_v4 = vpop.f32.mrb[43].mxu1  ;;  %1877 = vst [vmem:[#allocation8 + $0x128] sm:$0xff] %v1813_v60  ;;  %v1815_v6 = vmul.f32 %v1751_v52, %v1655_v61  ;;  %v1704_v60 = vld [vmem:[#allocation7 + $0xc0] sm:$0xff] }
 0x19f   :  { %v1291_v3 = vadd.f32 %v1290_v1, %v1097_v0  ;;  %v1292_v5 = vpop.f32.mrb[43].mxu0  ;;  %1878 = vst [vmem:[#allocation8 + $0x130] sm:$0xff] %v1814_v2  ;;  %v1592_v10 = vadd.f32 %v2490_v8, %v1287_v57 }
 0x1a0   :  { %v1293_v9 = vadd.f32 %v1292_v5, %v1099_v4  ;;  %1879 = vst [vmem:[#allocation8 + $0x138] sm:$0xff] %v1815_v6  ;;  %v1593_v12 = vadd.f32 %v2492_v13, %v1289_v63  ;;  %v1705_v5 = vld [vmem:[#allocation7 + $0xc8] sm:$0xff] }
 0x1a1   :  { %v1656_v15 = vmax.f32 %v1592_v10, 0.0  ;;  %v1594_v16 = vadd.f32 %v2490_v8, %v1291_v3 }
 0x1a2   :  { %v1657_v18 = vmax.f32 %v1593_v12, 0.0  ;;  %v1595_v19 = vadd.f32 %v2492_v13, %v1293_v9  ;;  %v1760_v9 = vunpack.c.l.bf16 %v1704_v60 }
 0x1a3   :  { %v1103_v21 = vpop.f32.mrb[44].mxu1  ;;  %v1816_v23 = vmul.f32 %v1752_v11, %v1656_v15  ;;  %v1658_v24 = vmax.f32 %v1594_v16, 0.0  ;;  %v1761_v11 = vunpack.c.h.bf16 %v1704_v60  ;;  %v1762_v15 = vunpack.c.l.bf16 %v1705_v5 }
 0x1a4   :  { %v1296_v22 = vpop.f32.mrb[44].mxu0  ;;  %v1105_v26 = vpop.f32.mrb[45].mxu1  ;;  %v1817_v28 = vmul.f32 %v1753_v14, %v1657_v18  ;;  %v1659_v29 = vmax.f32 %v1595_v19, 0.0  ;;  %v1763_v18 = vunpack.c.h.bf16 %v1705_v5 }
 0x1a5   :  { %v1297_v25 = vadd.f32 %v1296_v22, %v1103_v21  ;;  %v1298_v27 = vpop.f32.mrb[45].mxu0  ;;  %v1107_v32 = vpop.f32.mrb[46].mxu1  ;;  %1880 = vst [vmem:[#allocation8 + $0x140] sm:$0xff] %v1816_v23  ;;  %v1818_v34 = vmul.f32 %v1754_v17, %v1658_v24 }
 0x1a6   :  { %v1299_v31 = vadd.f32 %v1298_v27, %v1105_v26  ;;  %v1300_v33 = vpop.f32.mrb[46].mxu0  ;;  %v1109_v36 = vpop.f32.mrb[47].mxu1  ;;  %1881 = vst [vmem:[#allocation8 + $0x148] sm:$0xff] %v1817_v28  ;;  %v1819_v38 = vmul.f32 %v1755_v20, %v1659_v29  ;;  %v1706_v28 = vld [vmem:[#allocation7 + $0xd0] sm:$0xff] }
 0x1a7   :  { %v1301_v35 = vadd.f32 %v1300_v33, %v1107_v32  ;;  %v1302_v37 = vpop.f32.mrb[47].mxu0  ;;  %1882 = vst [vmem:[#allocation8 + $0x150] sm:$0xff] %v1818_v34  ;;  %v1596_v41 = vadd.f32 %v2490_v8, %v1297_v25 }
 0x1a8   :  { %v1303_v40 = vadd.f32 %v1302_v37, %v1109_v36  ;;  %1883 = vst [vmem:[#allocation8 + $0x158] sm:$0xff] %v1819_v38  ;;  %v1597_v43 = vadd.f32 %v2492_v13, %v1299_v31  ;;  %v1707_v37 = vld [vmem:[#allocation7 + $0xd8] sm:$0xff] }
 0x1a9   :  { %v1660_v45 = vmax.f32 %v1596_v41, 0.0  ;;  %v1598_v46 = vadd.f32 %v2490_v8, %v1301_v35 }
 0x1aa   :  { %v1661_v48 = vmax.f32 %v1597_v43, 0.0  ;;  %v1599_v49 = vadd.f32 %v2492_v13, %v1303_v40  ;;  %v1764_v40 = vunpack.c.l.bf16 %v1706_v28 }
 0x1ab   :  { %v1113_v51 = vpop.f32.mrb[48].mxu1  ;;  %v1820_v53 = vmul.f32 %v1756_v42, %v1660_v45  ;;  %v1662_v54 = vmax.f32 %v1598_v46, 0.0  ;;  %v1765_v42 = vunpack.c.h.bf16 %v1706_v28  ;;  %v1766_v45 = vunpack.c.l.bf16 %v1707_v37 }
 0x1ac   :  { %v1306_v52 = vpop.f32.mrb[48].mxu0  ;;  %v1115_v56 = vpop.f32.mrb[49].mxu1  ;;  %v1821_v58 = vmul.f32 %v1757_v44, %v1661_v48  ;;  %v1663_v59 = vmax.f32 %v1599_v49, 0.0  ;;  %v1767_v48 = vunpack.c.h.bf16 %v1707_v37 }
 0x1ad   :  { %v1307_v55 = vadd.f32 %v1306_v52, %v1113_v51  ;;  %v1308_v57 = vpop.f32.mrb[49].mxu0  ;;  %v1117_v62 = vpop.f32.mrb[50].mxu1  ;;  %1884 = vst [vmem:[#allocation8 + $0x160] sm:$0xff] %v1820_v53  ;;  %v1822_v0 = vmul.f32 %v1758_v47, %v1662_v54 }
 0x1ae   :  { %v1309_v61 = vadd.f32 %v1308_v57, %v1115_v56  ;;  %v1310_v63 = vpop.f32.mrb[50].mxu0  ;;  %v1119_v2 = vpop.f32.mrb[51].mxu1  ;;  %1885 = vst [vmem:[#allocation8 + $0x168] sm:$0xff] %v1821_v58  ;;  %v1823_v4 = vmul.f32 %v1759_v50, %v1663_v59  ;;  %v1708_v58 = vld [vmem:[#allocation7 + $0xe0] sm:$0xff] }
 0x1af   :  { %v1311_v1 = vadd.f32 %v1310_v63, %v1117_v62  ;;  %v1312_v3 = vpop.f32.mrb[51].mxu0  ;;  %1886 = vst [vmem:[#allocation8 + $0x170] sm:$0xff] %v1822_v0  ;;  %v1600_v7 = vadd.f32 %v2490_v8, %v1307_v55 }
 0x1b0   :  { %v1313_v6 = vadd.f32 %v1312_v3, %v1119_v2  ;;  %1887 = vst [vmem:[#allocation8 + $0x178] sm:$0xff] %v1823_v4  ;;  %v1601_v10 = vadd.f32 %v2492_v13, %v1309_v61  ;;  %v1709_v3 = vld [vmem:[#allocation7 + $0xe8] sm:$0xff] }
 0x1b1   :  { %v1664_v12 = vmax.f32 %v1600_v7, 0.0  ;;  %v1602_v14 = vadd.f32 %v2490_v8, %v1311_v1 }
 0x1b2   :  { %v1665_v16 = vmax.f32 %v1601_v10, 0.0  ;;  %v1603_v17 = vadd.f32 %v2492_v13, %v1313_v6  ;;  %v1768_v6 = vunpack.c.l.bf16 %v1708_v58 }
 0x1b3   :  { %v1123_v19 = vpop.f32.mrb[52].mxu1  ;;  %v1824_v21 = vmul.f32 %v1760_v9, %v1664_v12  ;;  %v1666_v22 = vmax.f32 %v1602_v14, 0.0  ;;  %v1769_v9 = vunpack.c.h.bf16 %v1708_v58  ;;  %v1770_v12 = vunpack.c.l.bf16 %v1709_v3 }
 0x1b4   :  { %v1316_v20 = vpop.f32.mrb[52].mxu0  ;;  %v1125_v24 = vpop.f32.mrb[53].mxu1  ;;  %v1825_v26 = vmul.f32 %v1761_v11, %v1665_v16  ;;  %v1667_v27 = vmax.f32 %v1603_v17, 0.0  ;;  %v1771_v16 = vunpack.c.h.bf16 %v1709_v3 }
 0x1b5   :  { %v1317_v23 = vadd.f32 %v1316_v20, %v1123_v19  ;;  %v1318_v25 = vpop.f32.mrb[53].mxu0  ;;  %v1127_v30 = vpop.f32.mrb[54].mxu1  ;;  %1888 = vst [vmem:[#allocation8 + $0x180] sm:$0xff] %v1824_v21  ;;  %v1826_v32 = vmul.f32 %v1762_v15, %v1666_v22 }
 0x1b6   :  { %v1319_v29 = vadd.f32 %v1318_v25, %v1125_v24  ;;  %v1320_v31 = vpop.f32.mrb[54].mxu0  ;;  %v1129_v34 = vpop.f32.mrb[55].mxu1  ;;  %1889 = vst [vmem:[#allocation8 + $0x188] sm:$0xff] %v1825_v26  ;;  %v1827_v36 = vmul.f32 %v1763_v18, %v1667_v27  ;;  %v1710_v26 = vld [vmem:[#allocation7 + $0xf0] sm:$0xff] }
 0x1b7   :  { %v1321_v33 = vadd.f32 %v1320_v31, %v1127_v30  ;;  %v1322_v35 = vpop.f32.mrb[55].mxu0  ;;  %1890 = vst [vmem:[#allocation8 + $0x190] sm:$0xff] %v1826_v32  ;;  %v1604_v39 = vadd.f32 %v2490_v8, %v1317_v23 }
 0x1b8   :  { %v1323_v38 = vadd.f32 %v1322_v35, %v1129_v34  ;;  %1891 = vst [vmem:[#allocation8 + $0x198] sm:$0xff] %v1827_v36  ;;  %v1605_v41 = vadd.f32 %v2492_v13, %v1319_v29  ;;  %v1711_v35 = vld [vmem:[#allocation7 + $0xf8] sm:$0xff] }
 0x1b9   :  { %v1668_v43 = vmax.f32 %v1604_v39, 0.0  ;;  %v1606_v44 = vadd.f32 %v2490_v8, %v1321_v33 }
 0x1ba   :  { %v1669_v46 = vmax.f32 %v1605_v41, 0.0  ;;  %v1607_v47 = vadd.f32 %v2492_v13, %v1323_v38  ;;  %v1772_v38 = vunpack.c.l.bf16 %v1710_v26 }
 0x1bb   :  { %v1133_v49 = vpop.f32.mrb[56].mxu1  ;;  %v1828_v51 = vmul.f32 %v1764_v40, %v1668_v43  ;;  %v1670_v52 = vmax.f32 %v1606_v44, 0.0  ;;  %v1773_v40 = vunpack.c.h.bf16 %v1710_v26  ;;  %v1774_v43 = vunpack.c.l.bf16 %v1711_v35 }
 0x1bc   :  { %v1326_v50 = vpop.f32.mrb[56].mxu0  ;;  %v1135_v54 = vpop.f32.mrb[57].mxu1  ;;  %v1829_v56 = vmul.f32 %v1765_v42, %v1669_v46  ;;  %v1671_v57 = vmax.f32 %v1607_v47, 0.0  ;;  %v1775_v46 = vunpack.c.h.bf16 %v1711_v35 }
 0x1bd   :  { %v1327_v53 = vadd.f32 %v1326_v50, %v1133_v49  ;;  %v1328_v55 = vpop.f32.mrb[57].mxu0  ;;  %v1137_v60 = vpop.f32.mrb[58].mxu1  ;;  %1892 = vst [vmem:[#allocation8 + $0x1a0] sm:$0xff] %v1828_v51  ;;  %v1830_v62 = vmul.f32 %v1766_v45, %v1670_v52 }
 0x1be   :  { %v1329_v59 = vadd.f32 %v1328_v55, %v1135_v54  ;;  %v1330_v61 = vpop.f32.mrb[58].mxu0  ;;  %v1139_v0 = vpop.f32.mrb[59].mxu1  ;;  %1893 = vst [vmem:[#allocation8 + $0x1a8] sm:$0xff] %v1829_v56  ;;  %v1831_v2 = vmul.f32 %v1767_v48, %v1671_v57 }
 0x1bf   :  { %v1331_v63 = vadd.f32 %v1330_v61, %v1137_v60  ;;  %v1332_v1 = vpop.f32.mrb[59].mxu0  ;;  %1894 = vst [vmem:[#allocation8 + $0x1b0] sm:$0xff] %v1830_v62  ;;  %v1608_v5 = vadd.f32 %v2490_v8, %v1327_v53 }
 0x1c0   :  { %v1333_v4 = vadd.f32 %v1332_v1, %v1139_v0  ;;  %1895 = vst [vmem:[#allocation8 + $0x1b8] sm:$0xff] %v1831_v2  ;;  %v1609_v7 = vadd.f32 %v2492_v13, %v1329_v59 }
 0x1c1   :  { %v1672_v10 = vmax.f32 %v1608_v5, 0.0  ;;  %v1610_v11 = vadd.f32 %v2490_v8, %v1331_v63 }
 0x1c2   :  { %v1673_v14 = vmax.f32 %v1609_v7, 0.0  ;;  %v1611_v15 = vadd.f32 %v2492_v13, %v1333_v4 }
 0x1c3   :  { %v1143_v17 = vpop.f32.mrb[60].mxu1  ;;  %v1832_v19 = vmul.f32 %v1768_v6, %v1672_v10  ;;  %v1674_v20 = vmax.f32 %v1610_v11, 0.0 }
 0x1c4   :  { %v1336_v18 = vpop.f32.mrb[60].mxu0  ;;  %v1145_v22 = vpop.f32.mrb[61].mxu1  ;;  %v1833_v24 = vmul.f32 %v1769_v9, %v1673_v14  ;;  %v1675_v25 = vmax.f32 %v1611_v15, 0.0 }
 0x1c5   :  { %v1337_v21 = vadd.f32 %v1336_v18, %v1143_v17  ;;  %v1338_v23 = vpop.f32.mrb[61].mxu0  ;;  %v1147_v28 = vpop.f32.mrb[62].mxu1  ;;  %1896 = vst [vmem:[#allocation8 + $0x1c0] sm:$0xff] %v1832_v19  ;;  %v1834_v30 = vmul.f32 %v1770_v12, %v1674_v20 }
 0x1c6   :  { %v1339_v27 = vadd.f32 %v1338_v23, %v1145_v22  ;;  %v1340_v29 = vpop.f32.mrb[62].mxu0  ;;  %v1149_v32 = vpop.f32.mrb[63].mxu1  ;;  %1897 = vst [vmem:[#allocation8 + $0x1c8] sm:$0xff] %v1833_v24  ;;  %v1835_v34 = vmul.f32 %v1771_v16, %v1675_v25 }
 0x1c7   :  { %v1341_v31 = vadd.f32 %v1340_v29, %v1147_v28  ;;  %v1342_v33 = vpop.f32.mrb[63].mxu0  ;;  %1898 = vst [vmem:[#allocation8 + $0x1d0] sm:$0xff] %v1834_v30  ;;  %v1612_v37 = vadd.f32 %v2490_v8, %v1337_v21 }
 0x1c8   :  { %v1343_v36 = vadd.f32 %v1342_v33, %v1149_v32  ;;  %1899 = vst [vmem:[#allocation8 + $0x1d8] sm:$0xff] %v1835_v34  ;;  %v1613_v39 = vadd.f32 %v2492_v13, %v1339_v27 }
 0x1c9   :  { %v1676_v41 = vmax.f32 %v1612_v37, 0.0  ;;  %v1614_v42 = vadd.f32 %v2490_v8, %v1341_v31 }
 0x1ca   :  { %v1677_v44 = vmax.f32 %v1613_v39, 0.0  ;;  %v1615_v45 = vadd.f32 %v2492_v13, %v1343_v36 }
 0x1cb   :  { %v1836_v47 = vmul.f32 %v1772_v38, %v1676_v41  ;;  %v1678_v48 = vmax.f32 %v1614_v42, 0.0 }
 0x1cc   :  { %v1837_v49 = vmul.f32 %v1773_v40, %v1677_v44  ;;  %v1679_v50 = vmax.f32 %v1615_v45, 0.0 }
 0x1cd   :  { %1900 = vst [vmem:[#allocation8 + $0x1e0] sm:$0xff] %v1836_v47  ;;  %v1838_v51 = vmul.f32 %v1774_v43, %v1678_v48 }
 0x1ce   :  { %1901 = vst [vmem:[#allocation8 + $0x1e8] sm:$0xff] %v1837_v49  ;;  %v1839_v52 = vmul.f32 %v1775_v46, %v1679_v50 }
 0x1cf   :  { %1902 = vst [vmem:[#allocation8 + $0x1f0] sm:$0xff] %v1838_v51 }
 0x1d0   :  { %1903 = vst [vmem:[#allocation8 + $0x1f8] sm:$0xff] %v1839_v52 }
 0x1d1   :  { %2392 = shalt.err (!%p2389_p0)
}
 0x1d2   :  { %s2393_s6 = scalar_lea.hbm %s2577_s4, 8192 }
 0x1d3   :  { %p2394_p1 = scmp.ne.s32.totalorder %s2577_s4, %s2393_s6  ;;  %p2397_p2 = scmp.lt.u32.totalorder %s2393_s6, %s2577_s4 }
 0x1d5   :  { %p2399_p3 = pnand %p2397_p2, %p2394_p1 }
 0x1d7   :  { %2402 = shalt.err (!%p2399_p3)
}
 0x1d8   :  { %1915 = dma.vmem_to_hbm [thread:$0]  %s1910_s26, 8192, %s2577_s4, [#allocation4], %s2413_s1, %s2413_s1, %s2414_s13  }
 0x1d9   :  { %2407 = dma.done.wait [#allocation4], 8192  }
 0x1da   :  { %2408 = vsyncadd [#allocation4], 4294959104 }
 0x1db   :  { %1919 = vsyncpa [#allocation3], 1 }
 0x1dc   :  { %1920 = vsyncpa [#allocation6], 1 }
 0x1dd   :  { %1921 = vsyncpa [#allocation4], 1 }

</bundles_post_ra>
